<compile_context>
chip_gen: v7x
topology: tpu7x:2x2x1
jax: 0.10.0
libtpu: 0.0.40
codegen_flags: <defaults>
</compile_context>

<pallas_src>
import math

import jax
import jax.numpy as jnp
from jax.experimental import pallas as pl
from jax.experimental.pallas import tpu as pltpu

D_MODEL = 32
HEADS = 4
DH = D_MODEL // HEADS     # dim per head
D_FF = 64
EPS = 1e-6                # onmt.modules.LayerNorm eps
NEG_INF = -1e18           # masked_fill value in MultiHeadedAttention (in-batch)
CROSS_NEG = -1e30         # cross-batch block-off for the flattened-batch attention


# ----------------------------------------------------------------------------
# Kernel helpers (traced inline, no extra HBM traffic)
# ----------------------------------------------------------------------------
def _layer_norm(v, g, b):
    # onmt LayerNorm: a_2 * (x - mean) / (std + eps) + b_2 with UNBIASED std
    # and eps added OUTSIDE the sqrt (exact OpenNMT semantics).
    d = v.shape[-1]
    mean = jnp.mean(v, axis=-1, keepdims=True)
    c = v - mean
    std = jnp.sqrt(jnp.sum(c * c, axis=-1, keepdims=True) * (1.0 / (d - 1)))
    inv = pl.reciprocal(std + EPS, approx=False)   # [T,1] reciprocal, then muls
    return c * inv * g + b


def _mh_attention(q_all, k_all, v_all, add_mask, keep_head0):
    """q_all [Tq,D], k_all/v_all [Tk,D] with head-major columns, add_mask [Tq,Tk]."""
    ctx_heads = []
    probs0 = None
    for h in range(HEADS):                       # static unroll, HEADS = 4
        sl = slice(h * DH, (h + 1) * DH)
        qh, kh, vh = q_all[:, sl], k_all[:, sl], v_all[:, sl]
        # scores[q, k] = <q_h[q], k_h[k]>   (1/sqrt(dh) pre-folded into Wq/bq)
        sc = pl.dot(qh, kh, trans_b=True) + add_mask
        sc = sc - jnp.max(sc, axis=-1, keepdims=True)
        p = jnp.exp(sc)
        inv = pl.reciprocal(jnp.sum(p, axis=-1, keepdims=True), approx=False)
        # un-normalised PV matmul, then scale the (much smaller) context
        ctx_heads.append(jnp.dot(p, vh, preferred_element_type=jnp.float32) * inv)
        if keep_head0 and h == 0:
            probs0 = p * inv                     # onmt top_attn (head 0)
    return jnp.concatenate(ctx_heads, axis=-1), probs0


# ----------------------------------------------------------------------------
# Fused decoder-layer kernel: ONE grid step covers the whole (flattened) batch
# ----------------------------------------------------------------------------
def _decoder_layer_kernel(
    x_ref, mem_ref, dmask_ref, smask_ref,
    ln1g_ref, ln1b_ref,
    wqkv_s_ref, bqkv_s_ref, wo_s_ref, bo_s_ref,
    ln2g_ref, ln2b_ref,
    wq_c_ref, bq_c_ref, wkv_c_ref, bkv_c_ref, wo_c_ref, bo_c_ref,
    lnfg_ref, lnfb_ref, w1_ref, b1_ref, w2_ref, b2_ref,
    out_ref, attn_ref, allinp_ref,
):
    x = x_ref[...]           # [T, D]  (T = B*Lq, batch flattened into rows)
    mem = mem_ref[...]       # [S, D]  (S = B*Ls)
    dmask = dmask_ref[...]   # [T, T]  additive block-diag causal+pad mask
    smask = smask_ref[...]   # [T, S]  additive block-diag src-pad mask
    d = x.shape[-1]

    # ---- LN1 + self attention + residual -----------------------------------
    input_norm = _layer_norm(x, ln1g_ref[...], ln1b_ref[...])
    allinp_ref[...] = input_norm.astype(allinp_ref.dtype)

    qkv = jnp.dot(input_norm, wqkv_s_ref[...],
                  preferred_element_type=jnp.float32) + bqkv_s_ref[...]   # [T, 3D]
    ctx_s, _ = _mh_attention(qkv[:, :d], qkv[:, d:2 * d], qkv[:, 2 * d:],
                             dmask, keep_head0=False)
    sa_out = jnp.dot(ctx_s, wo_s_ref[...],
                     preferred_element_type=jnp.float32) + bo_s_ref[...]
    query = sa_out + x                       # drop(query) + inputs (drop = id)

    # ---- LN2 + context attention over memory bank --------------------------
    query_norm = _layer_norm(query, ln2g_ref[...], ln2b_ref[...])
    q_c = jnp.dot(query_norm, wq_c_ref[...],
                  preferred_element_type=jnp.float32) + bq_c_ref[...]     # [T, D]
    kv_c = jnp.dot(mem, wkv_c_ref[...],
                   preferred_element_type=jnp.float32) + bkv_c_ref[...]   # [S, 2D]
    ctx_c, probs0 = _mh_attention(q_c, kv_c[:, :d], kv_c[:, d:],
                                  smask, keep_head0=True)
    attn_ref[...] = probs0.astype(attn_ref.dtype)   # head 0 only (onmt top_attn)
    ca_out = jnp.dot(ctx_c, wo_c_ref[...],
                     preferred_element_type=jnp.float32) + bo_c_ref[...]
    resid = ca_out + query                   # drop(mid) + query

    # ---- PositionwiseFeedForward: w2(relu(w1(LN(x)))) + x -------------------
    fn = _layer_norm(resid, lnfg_ref[...], lnfb_ref[...])
    h1 = jnp.maximum(
        jnp.dot(fn, w1_ref[...], preferred_element_type=jnp.float32) + b1_ref[...],
        0.0)
    y = jnp.dot(h1, w2_ref[...], preferred_element_type=jnp.float32) + b2_ref[...]
    out_ref[...] = (y + resid).astype(out_ref.dtype)


# ----------------------------------------------------------------------------
# Wrapper-side weight packing (done once under jit; XLA work is negligible)
# ----------------------------------------------------------------------------
def _pack_params(params):
    """Fold 1/sqrt(dh) into Wq/bq and fuse projections into single refs."""
    scale = 1.0 / math.sqrt(DH)
    s, c, f = params["self_attn"], params["ctx_attn"], params["ffn"]
    D = D_MODEL
    return dict(
        ln1_g=params["ln1_g"].reshape(1, D), ln1_b=params["ln1_b"].reshape(1, D),
        ln2_g=params["ln2_g"].reshape(1, D), ln2_b=params["ln2_b"].reshape(1, D),
        lnf_g=f["ln_g"].reshape(1, D), lnf_b=f["ln_b"].reshape(1, D),
        # self-attention: fused [Wq*scale | Wk | Wv] (columns already head-major:
        # torch's view(B,L,H,dh) means feature h*dh+j <-> head h, dim j)
        wqkv_s=jnp.concatenate([s["wq"] * scale, s["wk"], s["wv"]], axis=1),
        bqkv_s=jnp.concatenate([s["bq"] * scale, s["bk"], s["bv"]]).reshape(1, 3 * D),
        wo_s=s["wo"], bo_s=s["bo"].reshape(1, D),
        # context attention: Q from queries, fused [Wk | Wv] from memory bank
        wq_c=c["wq"] * scale, bq_c=(c["bq"] * scale).reshape(1, D),
        wkv_c=jnp.concatenate([c["wk"], c["wv"]], axis=1),
        bkv_c=jnp.concatenate([c["bk"], c["bv"]]).reshape(1, 2 * D),
        wo_c=c["wo"], bo_c=c["bo"].reshape(1, D),
        w1=f["w1"], b1=f["b1"].reshape(1, -1),
        w2=f["w2"], b2=f["b2"].reshape(1, D),
    )


# ----------------------------------------------------------------------------
# Decoder layer forward (single fused pallas_call, single grid step)
# ----------------------------------------------------------------------------
def transformer_decoder_layer(params, inputs, memory_bank, src_pad_mask, tgt_pad_mask):
    """
    inputs:        [B, Lq, D]  float32
    memory_bank:   [B, Ls, D]  float32
    src_pad_mask:  [B, Lq, Ls] int (1 = padded source position)
    tgt_pad_mask:  [B, Lq, Lq] int (1 = padded target position)
    returns (output [B,Lq,D], attn [B,Lq,Ls], all_input [B,Lq,D])
    """
    B, Lq, D = inputs.shape
    Ls = memory_bank.shape[1]
    F = params["ffn"]["w1"].shape[1]
    T, S = B * Lq, B * Ls

    # Block-diagonal additive masks for the flattened-batch attention:
    #   within batch : 0 (keep) / NEG_INF (onmt masked_fill value)
    #   cross batch  : CROSS_NEG << NEG_INF, so a fully-masked pad row still
    #                  renormalises over its own batch only (exact parity).
    subsequent = jnp.triu(jnp.ones((1, Lq, Lq), jnp.int32), k=1)
    dec_block = (tgt_pad_mask + subsequent) > 0            # [B, Lq, Lq]
    src_block = src_pad_mask > 0                           # [B, Lq, Ls]
    same = (jnp.arange(B)[:, None, None, None] ==
            jnp.arange(B)[None, None, :, None])            # [B, 1, B, 1]
    dec_add = jnp.where(
        same, jnp.where(dec_block[:, :, None, :], jnp.float32(NEG_INF), 0.0),
        jnp.float32(CROSS_NEG)).reshape(T, T).astype(jnp.float32)
    src_add = jnp.where(
        same, jnp.where(src_block[:, :, None, :], jnp.float32(NEG_INF), 0.0),
        jnp.float32(CROSS_NEG)).reshape(T, S).astype(jnp.float32)

    pk = _pack_params(params)
    x_flat = inputs.reshape(T, D)          # wrapper reshapes are layout plumbing
    mem_flat = memory_bank.reshape(S, D)

    def full(shape):
        return pl.BlockSpec(shape, lambda i, _s=shape: (0,) * len(_s))

    in_specs = [
        full((T, D)), full((S, D)), full((T, T)), full((T, S)),
        full((1, D)), full((1, D)),
        full((D, 3 * D)), full((1, 3 * D)), full((D, D)), full((1, D)),
        full((1, D)), full((1, D)),
        full((D, D)), full((1, D)), full((D, 2 * D)), full((1, 2 * D)),
        full((D, D)), full((1, D)),
        full((1, D)), full((1, D)), full((D, F)), full((1, F)),
        full((F, D)), full((1, D)),
    ]
    out_specs = (full((T, D)), full((T, S)), full((T, D)))
    out_shapes = (
        jax.ShapeDtypeStruct((T, D), jnp.float32),   # output tokens (flat)
        jax.ShapeDtypeStruct((T, S), jnp.float32),   # ctx-attn head-0 probs (flat)
        jax.ShapeDtypeStruct((T, D), jnp.float32),   # all_input (= input_norm, flat)
    )

    out_flat, attn_full, allinp_flat = pl.pallas_call(
        _decoder_layer_kernel,
        out_shape=out_shapes,
        grid=(1,),
        in_specs=in_specs,
        out_specs=out_specs,
        compiler_params=pltpu.CompilerParams(dimension_semantics=("arbitrary",)),
    )(x_flat, mem_flat, dec_add, src_add,
      pk["ln1_g"], pk["ln1_b"],
      pk["wqkv_s"], pk["bqkv_s"], pk["wo_s"], pk["bo_s"],
      pk["ln2_g"], pk["ln2_b"],
      pk["wq_c"], pk["bq_c"], pk["wkv_c"], pk["bkv_c"], pk["wo_c"], pk["bo_c"],
      pk["lnf_g"], pk["lnf_b"], pk["w1"], pk["b1"], pk["w2"], pk["b2"])

    output = out_flat.reshape(B, Lq, D)
    all_input = allinp_flat.reshape(B, Lq, D)
    # Pull the within-batch diagonal blocks of the flattened head-0 probs
    # (cross-batch columns are exactly zero and are discarded here).
    attn = attn_full.reshape(B, Lq, B, Ls)[jnp.arange(B), :, jnp.arange(B), :]
    return output, attn, all_input


# ----------------------------------------------------------------------------
# Deterministic parameter init (weights stored [in_features, out_features])
# ----------------------------------------------------------------------------
def init_params(key):
    def dense(k, fan_in, fan_out):
        kw, kb = jax.random.split(k)
        w = jax.random.normal(kw, (fan_in, fan_out), jnp.float32) * 0.05
        b = jax.random.normal(kb, (fan_out,), jnp.float32) * 0.01
        return w, b

    keys = jax.random.split(key, 16)

    def mha_params(ks):
        wk, bk = dense(ks[0], D_MODEL, D_MODEL)
        wv, bv = dense(ks[1], D_MODEL, D_MODEL)
        wq, bq = dense(ks[2], D_MODEL, D_MODEL)
        wo, bo = dense(ks[3], D_MODEL, D_MODEL)
        return dict(wk=wk, bk=bk, wv=wv, bv=bv, wq=wq, bq=bq, wo=wo, bo=bo)

    w1, b1 = dense(keys[8], D_MODEL, D_FF)
    w2, b2 = dense(keys[9], D_FF, D_MODEL)

    return dict(
        self_attn=mha_params(keys[0:4]),
        ctx_attn=mha_params(keys[4:8]),
        ffn=dict(ln_g=jnp.ones((D_MODEL,), jnp.float32),
                 ln_b=jnp.zeros((D_MODEL,), jnp.float32),
                 w1=w1, b1=b1, w2=w2, b2=b2),
        ln1_g=jnp.ones((D_MODEL,), jnp.float32),
        ln1_b=jnp.zeros((D_MODEL,), jnp.float32),
        ln2_g=jnp.ones((D_MODEL,), jnp.float32),
        ln2_b=jnp.zeros((D_MODEL,), jnp.float32),
    )


if __name__ == "__main__":
    B, LQ, LS = 2, 8, 16

    root = jax.random.PRNGKey(0)
    k_param, k_in, k_mem = jax.random.split(root, 3)

    params = init_params(k_param)
    inputs = jax.random.normal(k_in, (B, LQ, D_MODEL), jnp.float32)
    memory_bank = jax.random.normal(k_mem, (B, LS, D_MODEL), jnp.float32)

    # src_pad_mask: batch 1 has its last 2 source positions padded.
    src_pad_1d = jnp.zeros((B, LS), jnp.int32).at[1, LS - 2:].set(1)
    src_pad_mask = jnp.broadcast_to(src_pad_1d[:, None, :], (B, LQ, LS)).astype(jnp.int32)
    # tgt_pad_mask: no target padding.
    tgt_pad_mask = jnp.zeros((B, LQ, LQ), jnp.int32)

    # TODO(synk): average-attention branch and incremental decoding
    # (previous_input / layer_cache / step) are not implemented; this covers
    # the scaled-dot, previous_input=None path in eval mode.

    fwd = jax.jit(transformer_decoder_layer)
    output, attn, all_input = fwd(params, inputs, memory_bank, src_pad_mask, tgt_pad_mask)
    jax.block_until_ready((output, attn, all_input))

    assert output.shape == (B, LQ, D_MODEL)
    assert attn.shape == (B, LQ, LS)
    assert all_input.shape == (B, LQ, D_MODEL)
    # attention rows sum to 1 and padded source positions get ~0 weight
    assert bool(jnp.allclose(jnp.sum(attn, axis=-1), 1.0, atol=1e-5))
    assert bool(jnp.all(attn[1, :, LS - 2:] < 1e-12))

    print("KERNEL_OK")
</pallas_src>

<mosaic_0001>
module attributes {stable_mosaic.version = 11 : i64} {
  func.func @_decoder_layer_kernel(%arg0: i32, %arg1: memref<16x32xf32, #tpu.memory_space<vmem>>, %arg2: memref<32x32xf32, #tpu.memory_space<vmem>>, %arg3: memref<16x16xf32, #tpu.memory_space<vmem>>, %arg4: memref<16x32xf32, #tpu.memory_space<vmem>>, %arg5: memref<1x32xf32, #tpu.memory_space<vmem>>, %arg6: memref<1x32xf32, #tpu.memory_space<vmem>>, %arg7: memref<32x96xf32, #tpu.memory_space<vmem>>, %arg8: memref<1x96xf32, #tpu.memory_space<vmem>>, %arg9: memref<32x32xf32, #tpu.memory_space<vmem>>, %arg10: memref<1x32xf32, #tpu.memory_space<vmem>>, %arg11: memref<1x32xf32, #tpu.memory_space<vmem>>, %arg12: memref<1x32xf32, #tpu.memory_space<vmem>>, %arg13: memref<32x32xf32, #tpu.memory_space<vmem>>, %arg14: memref<1x32xf32, #tpu.memory_space<vmem>>, %arg15: memref<32x64xf32, #tpu.memory_space<vmem>>, %arg16: memref<1x64xf32, #tpu.memory_space<vmem>>, %arg17: memref<32x32xf32, #tpu.memory_space<vmem>>, %arg18: memref<1x32xf32, #tpu.memory_space<vmem>>, %arg19: memref<1x32xf32, #tpu.memory_space<vmem>>, %arg20: memref<1x32xf32, #tpu.memory_space<vmem>>, %arg21: memref<32x64xf32, #tpu.memory_space<vmem>>, %arg22: memref<1x64xf32, #tpu.memory_space<vmem>>, %arg23: memref<64x32xf32, #tpu.memory_space<vmem>>, %arg24: memref<1x32xf32, #tpu.memory_space<vmem>>, %arg25: memref<16x32xf32, #tpu.memory_space<vmem>>, %arg26: memref<16x32xf32, #tpu.memory_space<vmem>>, %arg27: memref<16x32xf32, #tpu.memory_space<vmem>>) attributes {dimension_semantics = [#tpu.dimension_semantics<arbitrary>], iteration_bounds = array<i64: 1>, scalar_prefetch = 0 : i64, scratch_operands = 0 : i64, tpu.core_type = #tpu.core_type<tc>, window_params = [{pipeline_mode = #tpu.pipeline_mode<synchronous>, transform_indices = @transform_0, window_bounds = array<i64: 16, 32>}, {pipeline_mode = #tpu.pipeline_mode<synchronous>, transform_indices = @transform_1, window_bounds = array<i64: 32, 32>}, {pipeline_mode = #tpu.pipeline_mode<synchronous>, transform_indices = @transform_2, window_bounds = array<i64: 16, 16>}, {pipeline_mode = #tpu.pipeline_mode<synchronous>, transform_indices = @transform_3, window_bounds = array<i64: 16, 32>}, {pipeline_mode = #tpu.pipeline_mode<synchronous>, transform_indices = @transform_4, window_bounds = array<i64: 1, 32>}, {pipeline_mode = #tpu.pipeline_mode<synchronous>, transform_indices = @transform_5, window_bounds = array<i64: 1, 32>}, {pipeline_mode = #tpu.pipeline_mode<synchronous>, transform_indices = @transform_6, window_bounds = array<i64: 32, 96>}, {pipeline_mode = #tpu.pipeline_mode<synchronous>, transform_indices = @transform_7, window_bounds = array<i64: 1, 96>}, {pipeline_mode = #tpu.pipeline_mode<synchronous>, transform_indices = @transform_8, window_bounds = array<i64: 32, 32>}, {pipeline_mode = #tpu.pipeline_mode<synchronous>, transform_indices = @transform_9, window_bounds = array<i64: 1, 32>}, {pipeline_mode = #tpu.pipeline_mode<synchronous>, transform_indices = @transform_10, window_bounds = array<i64: 1, 32>}, {pipeline_mode = #tpu.pipeline_mode<synchronous>, transform_indices = @transform_11, window_bounds = array<i64: 1, 32>}, {pipeline_mode = #tpu.pipeline_mode<synchronous>, transform_indices = @transform_12, window_bounds = array<i64: 32, 32>}, {pipeline_mode = #tpu.pipeline_mode<synchronous>, transform_indices = @transform_13, window_bounds = array<i64: 1, 32>}, {pipeline_mode = #tpu.pipeline_mode<synchronous>, transform_indices = @transform_14, window_bounds = array<i64: 32, 64>}, {pipeline_mode = #tpu.pipeline_mode<synchronous>, transform_indices = @transform_15, window_bounds = array<i64: 1, 64>}, {pipeline_mode = #tpu.pipeline_mode<synchronous>, transform_indices = @transform_16, window_bounds = array<i64: 32, 32>}, {pipeline_mode = #tpu.pipeline_mode<synchronous>, transform_indices = @transform_17, window_bounds = array<i64: 1, 32>}, {pipeline_mode = #tpu.pipeline_mode<synchronous>, transform_indices = @transform_18, window_bounds = array<i64: 1, 32>}, {pipeline_mode = #tpu.pipeline_mode<synchronous>, transform_indices = @transform_19, window_bounds = array<i64: 1, 32>}, {pipeline_mode = #tpu.pipeline_mode<synchronous>, transform_indices = @transform_20, window_bounds = array<i64: 32, 64>}, {pipeline_mode = #tpu.pipeline_mode<synchronous>, transform_indices = @transform_21, window_bounds = array<i64: 1, 64>}, {pipeline_mode = #tpu.pipeline_mode<synchronous>, transform_indices = @transform_22, window_bounds = array<i64: 64, 32>}, {pipeline_mode = #tpu.pipeline_mode<synchronous>, transform_indices = @transform_23, window_bounds = array<i64: 1, 32>}, {pipeline_mode = #tpu.pipeline_mode<synchronous>, transform_indices = @transform_24, window_bounds = array<i64: 16, 32>}, {pipeline_mode = #tpu.pipeline_mode<synchronous>, transform_indices = @transform_25, window_bounds = array<i64: 16, 32>}, {pipeline_mode = #tpu.pipeline_mode<synchronous>, transform_indices = @transform_26, window_bounds = array<i64: 16, 32>}]} {
    %c0 = arith.constant 0 : index
    %c0_0 = arith.constant 0 : index
    %0 = vector.load %arg1[%c0, %c0_0] : memref<16x32xf32, #tpu.memory_space<vmem>>, vector<16x32xf32>
    %c0_1 = arith.constant 0 : index
    %c0_2 = arith.constant 0 : index
    %1 = vector.load %arg2[%c0_1, %c0_2] : memref<32x32xf32, #tpu.memory_space<vmem>>, vector<32x32xf32>
    %c0_3 = arith.constant 0 : index
    %c0_4 = arith.constant 0 : index
    %2 = vector.load %arg3[%c0_3, %c0_4] : memref<16x16xf32, #tpu.memory_space<vmem>>, vector<16x16xf32>
    %c0_5 = arith.constant 0 : index
    %c0_6 = arith.constant 0 : index
    %3 = vector.load %arg4[%c0_5, %c0_6] : memref<16x32xf32, #tpu.memory_space<vmem>>, vector<16x32xf32>
    %c0_7 = arith.constant 0 : index
    %c0_8 = arith.constant 0 : index
    %4 = vector.load %arg5[%c0_7, %c0_8] : memref<1x32xf32, #tpu.memory_space<vmem>>, vector<1x32xf32>
    %c0_9 = arith.constant 0 : index
    %c0_10 = arith.constant 0 : index
    %5 = vector.load %arg6[%c0_9, %c0_10] : memref<1x32xf32, #tpu.memory_space<vmem>>, vector<1x32xf32>
    %cst = arith.constant dense<0.000000e+00> : vector<16xf32>
    %6 = vector.multi_reduction <add>, %0, %cst [1] : vector<16x32xf32> to vector<16xf32>
    %7 = vector.shape_cast %6 : vector<16xf32> to vector<16x1xf32>
    %cst_11 = arith.constant 3.200000e+01 : f32
    %8 = vector.broadcast %cst_11 : f32 to vector<16x1xf32>
    %9 = arith.divf %7, %8 : vector<16x1xf32>
    %10 = vector.broadcast %9 : vector<16x1xf32> to vector<16x32xf32>
    %11 = arith.subf %0, %10 : vector<16x32xf32>
    %12 = arith.mulf %11, %11 : vector<16x32xf32>
    %cst_12 = arith.constant dense<0.000000e+00> : vector<16xf32>
    %13 = vector.multi_reduction <add>, %12, %cst_12 [1] : vector<16x32xf32> to vector<16xf32>
    %14 = vector.shape_cast %13 : vector<16xf32> to vector<16x1xf32>
    %cst_13 = arith.constant 0.0322580636 : f32
    %15 = vector.broadcast %cst_13 : f32 to vector<16x1xf32>
    %16 = arith.mulf %14, %15 : vector<16x1xf32>
    %17 = math.sqrt %16 : vector<16x1xf32>
    %cst_14 = arith.constant 9.99999997E-7 : f32
    %18 = vector.broadcast %cst_14 : f32 to vector<16x1xf32>
    %19 = arith.addf %17, %18 : vector<16x1xf32>
    %20 = tpu.reciprocal %19 : vector<16x1xf32> -> vector<16x1xf32>
    %21 = vector.broadcast %20 : vector<16x1xf32> to vector<16x32xf32>
    %22 = arith.mulf %11, %21 : vector<16x32xf32>
    %23 = vector.broadcast %4 : vector<1x32xf32> to vector<16x32xf32>
    %24 = arith.mulf %22, %23 : vector<16x32xf32>
    %25 = vector.broadcast %5 : vector<1x32xf32> to vector<16x32xf32>
    %26 = arith.addf %24, %25 : vector<16x32xf32>
    %c0_15 = arith.constant 0 : index
    %c0_16 = arith.constant 0 : index
    %27 = vector.load %arg27[%c0_15, %c0_16] : memref<16x32xf32, #tpu.memory_space<vmem>>, vector<16x32xf32>
    tpu.vector_store %arg27[%c0_15, %c0_16], %26 {strides = array<i32>} : memref<16x32xf32, #tpu.memory_space<vmem>>, vector<16x32xf32>,
    %c0_17 = arith.constant 0 : index
    %c0_18 = arith.constant 0 : index
    %28 = vector.load %arg7[%c0_17, %c0_18] : memref<32x96xf32, #tpu.memory_space<vmem>>, vector<32x96xf32>
    %cst_19 = arith.constant dense<0.000000e+00> : vector<16x96xf32>
    %29 = tpu.matmul %26, %28, %cst_19 {dimension_numbers = #tpu.dot_dimension_numbers<[1], [0], [0], [1], [0, 0, 1, 1], [], []>} : vector<16x32xf32>, vector<32x96xf32>, vector<16x96xf32> -> vector<16x96xf32>
    %c0_20 = arith.constant 0 : index
    %c0_21 = arith.constant 0 : index
    %30 = vector.load %arg8[%c0_20, %c0_21] : memref<1x96xf32, #tpu.memory_space<vmem>>, vector<1x96xf32>
    %31 = vector.broadcast %30 : vector<1x96xf32> to vector<16x96xf32>
    %32 = arith.addf %29, %31 : vector<16x96xf32>
    %33 = vector.extract_strided_slice %32 {offsets = [0, 0], sizes = [16, 32], strides = [1, 1]} : vector<16x96xf32> to vector<16x32xf32>
    %34 = vector.extract_strided_slice %32 {offsets = [0, 32], sizes = [16, 32], strides = [1, 1]} : vector<16x96xf32> to vector<16x32xf32>
    %35 = vector.extract_strided_slice %32 {offsets = [0, 64], sizes = [16, 32], strides = [1, 1]} : vector<16x96xf32> to vector<16x32xf32>
    %36 = vector.extract_strided_slice %33 {offsets = [0, 0], sizes = [16, 8], strides = [1, 1]} : vector<16x32xf32> to vector<16x8xf32>
    %37 = vector.extract_strided_slice %34 {offsets = [0, 0], sizes = [16, 8], strides = [1, 1]} : vector<16x32xf32> to vector<16x8xf32>
    %38 = vector.extract_strided_slice %35 {offsets = [0, 0], sizes = [16, 8], strides = [1, 1]} : vector<16x32xf32> to vector<16x8xf32>
    %cst_22 = arith.constant dense<0.000000e+00> : vector<16x16xf32>
    %39 = tpu.matmul %36, %37, %cst_22 {dimension_numbers = #tpu.dot_dimension_numbers<[1], [1], [0], [0], [0, 0, 1, 0], [], []>} : vector<16x8xf32>, vector<16x8xf32>, vector<16x16xf32> -> vector<16x16xf32>
    %40 = arith.addf %39, %2 : vector<16x16xf32>
    %cst_23 = arith.constant dense<0xFF800000> : vector<16xf32>
    %41 = vector.multi_reduction <maximumf>, %40, %cst_23 [1] : vector<16x16xf32> to vector<16xf32>
    %42 = vector.shape_cast %41 : vector<16xf32> to vector<16x1xf32>
    %43 = vector.broadcast %42 : vector<16x1xf32> to vector<16x16xf32>
    %44 = arith.subf %40, %43 : vector<16x16xf32>
    %45 = math.exp %44 : vector<16x16xf32>
    %cst_24 = arith.constant dense<0.000000e+00> : vector<16xf32>
    %46 = vector.multi_reduction <add>, %45, %cst_24 [1] : vector<16x16xf32> to vector<16xf32>
    %47 = vector.shape_cast %46 : vector<16xf32> to vector<16x1xf32>
    %48 = tpu.reciprocal %47 : vector<16x1xf32> -> vector<16x1xf32>
    %cst_25 = arith.constant dense<0.000000e+00> : vector<16x8xf32>
    %49 = tpu.matmul %45, %38, %cst_25 {dimension_numbers = #tpu.dot_dimension_numbers<[1], [0], [0], [1], [0, 0, 1, 1], [], []>} : vector<16x16xf32>, vector<16x8xf32>, vector<16x8xf32> -> vector<16x8xf32>
    %50 = vector.broadcast %48 : vector<16x1xf32> to vector<16x8xf32>
    %51 = arith.mulf %49, %50 : vector<16x8xf32>
    %52 = vector.extract_strided_slice %33 {offsets = [0, 8], sizes = [16, 8], strides = [1, 1]} : vector<16x32xf32> to vector<16x8xf32>
    %53 = vector.extract_strided_slice %34 {offsets = [0, 8], sizes = [16, 8], strides = [1, 1]} : vector<16x32xf32> to vector<16x8xf32>
    %54 = vector.extract_strided_slice %35 {offsets = [0, 8], sizes = [16, 8], strides = [1, 1]} : vector<16x32xf32> to vector<16x8xf32>
    %cst_26 = arith.constant dense<0.000000e+00> : vector<16x16xf32>
    %55 = tpu.matmul %52, %53, %cst_26 {dimension_numbers = #tpu.dot_dimension_numbers<[1], [1], [0], [0], [0, 0, 1, 0], [], []>} : vector<16x8xf32>, vector<16x8xf32>, vector<16x16xf32> -> vector<16x16xf32>
    %56 = arith.addf %55, %2 : vector<16x16xf32>
    %cst_27 = arith.constant dense<0xFF800000> : vector<16xf32>
    %57 = vector.multi_reduction <maximumf>, %56, %cst_27 [1] : vector<16x16xf32> to vector<16xf32>
    %58 = vector.shape_cast %57 : vector<16xf32> to vector<16x1xf32>
    %59 = vector.broadcast %58 : vector<16x1xf32> to vector<16x16xf32>
    %60 = arith.subf %56, %59 : vector<16x16xf32>
    %61 = math.exp %60 : vector<16x16xf32>
    %cst_28 = arith.constant dense<0.000000e+00> : vector<16xf32>
    %62 = vector.multi_reduction <add>, %61, %cst_28 [1] : vector<16x16xf32> to vector<16xf32>
    %63 = vector.shape_cast %62 : vector<16xf32> to vector<16x1xf32>
    %64 = tpu.reciprocal %63 : vector<16x1xf32> -> vector<16x1xf32>
    %cst_29 = arith.constant dense<0.000000e+00> : vector<16x8xf32>
    %65 = tpu.matmul %61, %54, %cst_29 {dimension_numbers = #tpu.dot_dimension_numbers<[1], [0], [0], [1], [0, 0, 1, 1], [], []>} : vector<16x16xf32>, vector<16x8xf32>, vector<16x8xf32> -> vector<16x8xf32>
    %66 = vector.broadcast %64 : vector<16x1xf32> to vector<16x8xf32>
    %67 = arith.mulf %65, %66 : vector<16x8xf32>
    %68 = vector.extract_strided_slice %33 {offsets = [0, 16], sizes = [16, 8], strides = [1, 1]} : vector<16x32xf32> to vector<16x8xf32>
    %69 = vector.extract_strided_slice %34 {offsets = [0, 16], sizes = [16, 8], strides = [1, 1]} : vector<16x32xf32> to vector<16x8xf32>
    %70 = vector.extract_strided_slice %35 {offsets = [0, 16], sizes = [16, 8], strides = [1, 1]} : vector<16x32xf32> to vector<16x8xf32>
    %cst_30 = arith.constant dense<0.000000e+00> : vector<16x16xf32>
    %71 = tpu.matmul %68, %69, %cst_30 {dimension_numbers = #tpu.dot_dimension_numbers<[1], [1], [0], [0], [0, 0, 1, 0], [], []>} : vector<16x8xf32>, vector<16x8xf32>, vector<16x16xf32> -> vector<16x16xf32>
    %72 = arith.addf %71, %2 : vector<16x16xf32>
    %cst_31 = arith.constant dense<0xFF800000> : vector<16xf32>
    %73 = vector.multi_reduction <maximumf>, %72, %cst_31 [1] : vector<16x16xf32> to vector<16xf32>
    %74 = vector.shape_cast %73 : vector<16xf32> to vector<16x1xf32>
    %75 = vector.broadcast %74 : vector<16x1xf32> to vector<16x16xf32>
    %76 = arith.subf %72, %75 : vector<16x16xf32>
    %77 = math.exp %76 : vector<16x16xf32>
    %cst_32 = arith.constant dense<0.000000e+00> : vector<16xf32>
    %78 = vector.multi_reduction <add>, %77, %cst_32 [1] : vector<16x16xf32> to vector<16xf32>
    %79 = vector.shape_cast %78 : vector<16xf32> to vector<16x1xf32>
    %80 = tpu.reciprocal %79 : vector<16x1xf32> -> vector<16x1xf32>
    %cst_33 = arith.constant dense<0.000000e+00> : vector<16x8xf32>
    %81 = tpu.matmul %77, %70, %cst_33 {dimension_numbers = #tpu.dot_dimension_numbers<[1], [0], [0], [1], [0, 0, 1, 1], [], []>} : vector<16x16xf32>, vector<16x8xf32>, vector<16x8xf32> -> vector<16x8xf32>
    %82 = vector.broadcast %80 : vector<16x1xf32> to vector<16x8xf32>
    %83 = arith.mulf %81, %82 : vector<16x8xf32>
    %84 = vector.extract_strided_slice %33 {offsets = [0, 24], sizes = [16, 8], strides = [1, 1]} : vector<16x32xf32> to vector<16x8xf32>
    %85 = vector.extract_strided_slice %34 {offsets = [0, 24], sizes = [16, 8], strides = [1, 1]} : vector<16x32xf32> to vector<16x8xf32>
    %86 = vector.extract_strided_slice %35 {offsets = [0, 24], sizes = [16, 8], strides = [1, 1]} : vector<16x32xf32> to vector<16x8xf32>
    %cst_34 = arith.constant dense<0.000000e+00> : vector<16x16xf32>
    %87 = tpu.matmul %84, %85, %cst_34 {dimension_numbers = #tpu.dot_dimension_numbers<[1], [1], [0], [0], [0, 0, 1, 0], [], []>} : vector<16x8xf32>, vector<16x8xf32>, vector<16x16xf32> -> vector<16x16xf32>
    %88 = arith.addf %87, %2 : vector<16x16xf32>
    %cst_35 = arith.constant dense<0xFF800000> : vector<16xf32>
    %89 = vector.multi_reduction <maximumf>, %88, %cst_35 [1] : vector<16x16xf32> to vector<16xf32>
    %90 = vector.shape_cast %89 : vector<16xf32> to vector<16x1xf32>
    %91 = vector.broadcast %90 : vector<16x1xf32> to vector<16x16xf32>
    %92 = arith.subf %88, %91 : vector<16x16xf32>
    %93 = math.exp %92 : vector<16x16xf32>
    %cst_36 = arith.constant dense<0.000000e+00> : vector<16xf32>
    %94 = vector.multi_reduction <add>, %93, %cst_36 [1] : vector<16x16xf32> to vector<16xf32>
    %95 = vector.shape_cast %94 : vector<16xf32> to vector<16x1xf32>
    %96 = tpu.reciprocal %95 : vector<16x1xf32> -> vector<16x1xf32>
    %cst_37 = arith.constant dense<0.000000e+00> : vector<16x8xf32>
    %97 = tpu.matmul %93, %86, %cst_37 {dimension_numbers = #tpu.dot_dimension_numbers<[1], [0], [0], [1], [0, 0, 1, 1], [], []>} : vector<16x16xf32>, vector<16x8xf32>, vector<16x8xf32> -> vector<16x8xf32>
    %98 = vector.broadcast %96 : vector<16x1xf32> to vector<16x8xf32>
    %99 = arith.mulf %97, %98 : vector<16x8xf32>
    %100 = tpu.concatenate %51, %67, %83, %99 in 1 : vector<16x8xf32>, vector<16x8xf32>, vector<16x8xf32>, vector<16x8xf32> -> vector<16x32xf32>
    %c0_38 = arith.constant 0 : index
    %c0_39 = arith.constant 0 : index
    %101 = vector.load %arg9[%c0_38, %c0_39] : memref<32x32xf32, #tpu.memory_space<vmem>>, vector<32x32xf32>
    %cst_40 = arith.constant dense<0.000000e+00> : vector<16x32xf32>
    %102 = tpu.matmul %100, %101, %cst_40 {dimension_numbers = #tpu.dot_dimension_numbers<[1], [0], [0], [1], [0, 0, 1, 1], [], []>} : vector<16x32xf32>, vector<32x32xf32>, vector<16x32xf32> -> vector<16x32xf32>
    %c0_41 = arith.constant 0 : index
    %c0_42 = arith.constant 0 : index
    %103 = vector.load %arg10[%c0_41, %c0_42] : memref<1x32xf32, #tpu.memory_space<vmem>>, vector<1x32xf32>
    %104 = vector.broadcast %103 : vector<1x32xf32> to vector<16x32xf32>
    %105 = arith.addf %102, %104 : vector<16x32xf32>
    %106 = arith.addf %105, %0 : vector<16x32xf32>
    %c0_43 = arith.constant 0 : index
    %c0_44 = arith.constant 0 : index
    %107 = vector.load %arg11[%c0_43, %c0_44] : memref<1x32xf32, #tpu.memory_space<vmem>>, vector<1x32xf32>
    %c0_45 = arith.constant 0 : index
    %c0_46 = arith.constant 0 : index
    %108 = vector.load %arg12[%c0_45, %c0_46] : memref<1x32xf32, #tpu.memory_space<vmem>>, vector<1x32xf32>
    %cst_47 = arith.constant dense<0.000000e+00> : vector<16xf32>
    %109 = vector.multi_reduction <add>, %106, %cst_47 [1] : vector<16x32xf32> to vector<16xf32>
    %110 = vector.shape_cast %109 : vector<16xf32> to vector<16x1xf32>
    %cst_48 = arith.constant 3.200000e+01 : f32
    %111 = vector.broadcast %cst_48 : f32 to vector<16x1xf32>
    %112 = arith.divf %110, %111 : vector<16x1xf32>
    %113 = vector.broadcast %112 : vector<16x1xf32> to vector<16x32xf32>
    %114 = arith.subf %106, %113 : vector<16x32xf32>
    %115 = arith.mulf %114, %114 : vector<16x32xf32>
    %cst_49 = arith.constant dense<0.000000e+00> : vector<16xf32>
    %116 = vector.multi_reduction <add>, %115, %cst_49 [1] : vector<16x32xf32> to vector<16xf32>
    %117 = vector.shape_cast %116 : vector<16xf32> to vector<16x1xf32>
    %cst_50 = arith.constant 0.0322580636 : f32
    %118 = vector.broadcast %cst_50 : f32 to vector<16x1xf32>
    %119 = arith.mulf %117, %118 : vector<16x1xf32>
    %120 = math.sqrt %119 : vector<16x1xf32>
    %cst_51 = arith.constant 9.99999997E-7 : f32
    %121 = vector.broadcast %cst_51 : f32 to vector<16x1xf32>
    %122 = arith.addf %120, %121 : vector<16x1xf32>
    %123 = tpu.reciprocal %122 : vector<16x1xf32> -> vector<16x1xf32>
    %124 = vector.broadcast %123 : vector<16x1xf32> to vector<16x32xf32>
    %125 = arith.mulf %114, %124 : vector<16x32xf32>
    %126 = vector.broadcast %107 : vector<1x32xf32> to vector<16x32xf32>
    %127 = arith.mulf %125, %126 : vector<16x32xf32>
    %128 = vector.broadcast %108 : vector<1x32xf32> to vector<16x32xf32>
    %129 = arith.addf %127, %128 : vector<16x32xf32>
    %c0_52 = arith.constant 0 : index
    %c0_53 = arith.constant 0 : index
    %130 = vector.load %arg13[%c0_52, %c0_53] : memref<32x32xf32, #tpu.memory_space<vmem>>, vector<32x32xf32>
    %cst_54 = arith.constant dense<0.000000e+00> : vector<16x32xf32>
    %131 = tpu.matmul %129, %130, %cst_54 {dimension_numbers = #tpu.dot_dimension_numbers<[1], [0], [0], [1], [0, 0, 1, 1], [], []>} : vector<16x32xf32>, vector<32x32xf32>, vector<16x32xf32> -> vector<16x32xf32>
    %c0_55 = arith.constant 0 : index
    %c0_56 = arith.constant 0 : index
    %132 = vector.load %arg14[%c0_55, %c0_56] : memref<1x32xf32, #tpu.memory_space<vmem>>, vector<1x32xf32>
    %133 = vector.broadcast %132 : vector<1x32xf32> to vector<16x32xf32>
    %134 = arith.addf %131, %133 : vector<16x32xf32>
    %c0_57 = arith.constant 0 : index
    %c0_58 = arith.constant 0 : index
    %135 = vector.load %arg15[%c0_57, %c0_58] : memref<32x64xf32, #tpu.memory_space<vmem>>, vector<32x64xf32>
    %cst_59 = arith.constant dense<0.000000e+00> : vector<32x64xf32>
    %136 = tpu.matmul %1, %135, %cst_59 {dimension_numbers = #tpu.dot_dimension_numbers<[1], [0], [0], [1], [0, 0, 1, 1], [], []>} : vector<32x32xf32>, vector<32x64xf32>, vector<32x64xf32> -> vector<32x64xf32>
    %c0_60 = arith.constant 0 : index
    %c0_61 = arith.constant 0 : index
    %137 = vector.load %arg16[%c0_60, %c0_61] : memref<1x64xf32, #tpu.memory_space<vmem>>, vector<1x64xf32>
    %138 = vector.broadcast %137 : vector<1x64xf32> to vector<32x64xf32>
    %139 = arith.addf %136, %138 : vector<32x64xf32>
    %140 = vector.extract_strided_slice %139 {offsets = [0, 0], sizes = [32, 32], strides = [1, 1]} : vector<32x64xf32> to vector<32x32xf32>
    %141 = vector.extract_strided_slice %139 {offsets = [0, 32], sizes = [32, 32], strides = [1, 1]} : vector<32x64xf32> to vector<32x32xf32>
    %142 = vector.extract_strided_slice %134 {offsets = [0, 0], sizes = [16, 8], strides = [1, 1]} : vector<16x32xf32> to vector<16x8xf32>
    %143 = vector.extract_strided_slice %140 {offsets = [0, 0], sizes = [32, 8], strides = [1, 1]} : vector<32x32xf32> to vector<32x8xf32>
    %144 = vector.extract_strided_slice %141 {offsets = [0, 0], sizes = [32, 8], strides = [1, 1]} : vector<32x32xf32> to vector<32x8xf32>
    %cst_62 = arith.constant dense<0.000000e+00> : vector<16x32xf32>
    %145 = tpu.matmul %142, %143, %cst_62 {dimension_numbers = #tpu.dot_dimension_numbers<[1], [1], [0], [0], [0, 0, 1, 0], [], []>} : vector<16x8xf32>, vector<32x8xf32>, vector<16x32xf32> -> vector<16x32xf32>
    %146 = arith.addf %145, %3 : vector<16x32xf32>
    %cst_63 = arith.constant dense<0xFF800000> : vector<16xf32>
    %147 = vector.multi_reduction <maximumf>, %146, %cst_63 [1] : vector<16x32xf32> to vector<16xf32>
    %148 = vector.shape_cast %147 : vector<16xf32> to vector<16x1xf32>
    %149 = vector.broadcast %148 : vector<16x1xf32> to vector<16x32xf32>
    %150 = arith.subf %146, %149 : vector<16x32xf32>
    %151 = math.exp %150 : vector<16x32xf32>
    %cst_64 = arith.constant dense<0.000000e+00> : vector<16xf32>
    %152 = vector.multi_reduction <add>, %151, %cst_64 [1] : vector<16x32xf32> to vector<16xf32>
    %153 = vector.shape_cast %152 : vector<16xf32> to vector<16x1xf32>
    %154 = tpu.reciprocal %153 : vector<16x1xf32> -> vector<16x1xf32>
    %cst_65 = arith.constant dense<0.000000e+00> : vector<16x8xf32>
    %155 = tpu.matmul %151, %144, %cst_65 {dimension_numbers = #tpu.dot_dimension_numbers<[1], [0], [0], [1], [0, 0, 1, 1], [], []>} : vector<16x32xf32>, vector<32x8xf32>, vector<16x8xf32> -> vector<16x8xf32>
    %156 = vector.broadcast %154 : vector<16x1xf32> to vector<16x8xf32>
    %157 = arith.mulf %155, %156 : vector<16x8xf32>
    %158 = vector.broadcast %154 : vector<16x1xf32> to vector<16x32xf32>
    %159 = arith.mulf %151, %158 : vector<16x32xf32>
    %160 = vector.extract_strided_slice %134 {offsets = [0, 8], sizes = [16, 8], strides = [1, 1]} : vector<16x32xf32> to vector<16x8xf32>
    %161 = vector.extract_strided_slice %140 {offsets = [0, 8], sizes = [32, 8], strides = [1, 1]} : vector<32x32xf32> to vector<32x8xf32>
    %162 = vector.extract_strided_slice %141 {offsets = [0, 8], sizes = [32, 8], strides = [1, 1]} : vector<32x32xf32> to vector<32x8xf32>
    %cst_66 = arith.constant dense<0.000000e+00> : vector<16x32xf32>
    %163 = tpu.matmul %160, %161, %cst_66 {dimension_numbers = #tpu.dot_dimension_numbers<[1], [1], [0], [0], [0, 0, 1, 0], [], []>} : vector<16x8xf32>, vector<32x8xf32>, vector<16x32xf32> -> vector<16x32xf32>
    %164 = arith.addf %163, %3 : vector<16x32xf32>
    %cst_67 = arith.constant dense<0xFF800000> : vector<16xf32>
    %165 = vector.multi_reduction <maximumf>, %164, %cst_67 [1] : vector<16x32xf32> to vector<16xf32>
    %166 = vector.shape_cast %165 : vector<16xf32> to vector<16x1xf32>
    %167 = vector.broadcast %166 : vector<16x1xf32> to vector<16x32xf32>
    %168 = arith.subf %164, %167 : vector<16x32xf32>
    %169 = math.exp %168 : vector<16x32xf32>
    %cst_68 = arith.constant dense<0.000000e+00> : vector<16xf32>
    %170 = vector.multi_reduction <add>, %169, %cst_68 [1] : vector<16x32xf32> to vector<16xf32>
    %171 = vector.shape_cast %170 : vector<16xf32> to vector<16x1xf32>
    %172 = tpu.reciprocal %171 : vector<16x1xf32> -> vector<16x1xf32>
    %cst_69 = arith.constant dense<0.000000e+00> : vector<16x8xf32>
    %173 = tpu.matmul %169, %162, %cst_69 {dimension_numbers = #tpu.dot_dimension_numbers<[1], [0], [0], [1], [0, 0, 1, 1], [], []>} : vector<16x32xf32>, vector<32x8xf32>, vector<16x8xf32> -> vector<16x8xf32>
    %174 = vector.broadcast %172 : vector<16x1xf32> to vector<16x8xf32>
    %175 = arith.mulf %173, %174 : vector<16x8xf32>
    %176 = vector.extract_strided_slice %134 {offsets = [0, 16], sizes = [16, 8], strides = [1, 1]} : vector<16x32xf32> to vector<16x8xf32>
    %177 = vector.extract_strided_slice %140 {offsets = [0, 16], sizes = [32, 8], strides = [1, 1]} : vector<32x32xf32> to vector<32x8xf32>
    %178 = vector.extract_strided_slice %141 {offsets = [0, 16], sizes = [32, 8], strides = [1, 1]} : vector<32x32xf32> to vector<32x8xf32>
    %cst_70 = arith.constant dense<0.000000e+00> : vector<16x32xf32>
    %179 = tpu.matmul %176, %177, %cst_70 {dimension_numbers = #tpu.dot_dimension_numbers<[1], [1], [0], [0], [0, 0, 1, 0], [], []>} : vector<16x8xf32>, vector<32x8xf32>, vector<16x32xf32> -> vector<16x32xf32>
    %180 = arith.addf %179, %3 : vector<16x32xf32>
    %cst_71 = arith.constant dense<0xFF800000> : vector<16xf32>
    %181 = vector.multi_reduction <maximumf>, %180, %cst_71 [1] : vector<16x32xf32> to vector<16xf32>
    %182 = vector.shape_cast %181 : vector<16xf32> to vector<16x1xf32>
    %183 = vector.broadcast %182 : vector<16x1xf32> to vector<16x32xf32>
    %184 = arith.subf %180, %183 : vector<16x32xf32>
    %185 = math.exp %184 : vector<16x32xf32>
    %cst_72 = arith.constant dense<0.000000e+00> : vector<16xf32>
    %186 = vector.multi_reduction <add>, %185, %cst_72 [1] : vector<16x32xf32> to vector<16xf32>
    %187 = vector.shape_cast %186 : vector<16xf32> to vector<16x1xf32>
    %188 = tpu.reciprocal %187 : vector<16x1xf32> -> vector<16x1xf32>
    %cst_73 = arith.constant dense<0.000000e+00> : vector<16x8xf32>
    %189 = tpu.matmul %185, %178, %cst_73 {dimension_numbers = #tpu.dot_dimension_numbers<[1], [0], [0], [1], [0, 0, 1, 1], [], []>} : vector<16x32xf32>, vector<32x8xf32>, vector<16x8xf32> -> vector<16x8xf32>
    %190 = vector.broadcast %188 : vector<16x1xf32> to vector<16x8xf32>
    %191 = arith.mulf %189, %190 : vector<16x8xf32>
    %192 = vector.extract_strided_slice %134 {offsets = [0, 24], sizes = [16, 8], strides = [1, 1]} : vector<16x32xf32> to vector<16x8xf32>
    %193 = vector.extract_strided_slice %140 {offsets = [0, 24], sizes = [32, 8], strides = [1, 1]} : vector<32x32xf32> to vector<32x8xf32>
    %194 = vector.extract_strided_slice %141 {offsets = [0, 24], sizes = [32, 8], strides = [1, 1]} : vector<32x32xf32> to vector<32x8xf32>
    %cst_74 = arith.constant dense<0.000000e+00> : vector<16x32xf32>
    %195 = tpu.matmul %192, %193, %cst_74 {dimension_numbers = #tpu.dot_dimension_numbers<[1], [1], [0], [0], [0, 0, 1, 0], [], []>} : vector<16x8xf32>, vector<32x8xf32>, vector<16x32xf32> -> vector<16x32xf32>
    %196 = arith.addf %195, %3 : vector<16x32xf32>
    %cst_75 = arith.constant dense<0xFF800000> : vector<16xf32>
    %197 = vector.multi_reduction <maximumf>, %196, %cst_75 [1] : vector<16x32xf32> to vector<16xf32>
    %198 = vector.shape_cast %197 : vector<16xf32> to vector<16x1xf32>
    %199 = vector.broadcast %198 : vector<16x1xf32> to vector<16x32xf32>
    %200 = arith.subf %196, %199 : vector<16x32xf32>
    %201 = math.exp %200 : vector<16x32xf32>
    %cst_76 = arith.constant dense<0.000000e+00> : vector<16xf32>
    %202 = vector.multi_reduction <add>, %201, %cst_76 [1] : vector<16x32xf32> to vector<16xf32>
    %203 = vector.shape_cast %202 : vector<16xf32> to vector<16x1xf32>
    %204 = tpu.reciprocal %203 : vector<16x1xf32> -> vector<16x1xf32>
    %cst_77 = arith.constant dense<0.000000e+00> : vector<16x8xf32>
    %205 = tpu.matmul %201, %194, %cst_77 {dimension_numbers = #tpu.dot_dimension_numbers<[1], [0], [0], [1], [0, 0, 1, 1], [], []>} : vector<16x32xf32>, vector<32x8xf32>, vector<16x8xf32> -> vector<16x8xf32>
    %206 = vector.broadcast %204 : vector<16x1xf32> to vector<16x8xf32>
    %207 = arith.mulf %205, %206 : vector<16x8xf32>
    %208 = tpu.concatenate %157, %175, %191, %207 in 1 : vector<16x8xf32>, vector<16x8xf32>, vector<16x8xf32>, vector<16x8xf32> -> vector<16x32xf32>
    %c0_78 = arith.constant 0 : index
    %c0_79 = arith.constant 0 : index
    %209 = vector.load %arg26[%c0_78, %c0_79] : memref<16x32xf32, #tpu.memory_space<vmem>>, vector<16x32xf32>
    tpu.vector_store %arg26[%c0_78, %c0_79], %159 {strides = array<i32>} : memref<16x32xf32, #tpu.memory_space<vmem>>, vector<16x32xf32>,
    %c0_80 = arith.constant 0 : index
    %c0_81 = arith.constant 0 : index
    %210 = vector.load %arg17[%c0_80, %c0_81] : memref<32x32xf32, #tpu.memory_space<vmem>>, vector<32x32xf32>
    %cst_82 = arith.constant dense<0.000000e+00> : vector<16x32xf32>
    %211 = tpu.matmul %208, %210, %cst_82 {dimension_numbers = #tpu.dot_dimension_numbers<[1], [0], [0], [1], [0, 0, 1, 1], [], []>} : vector<16x32xf32>, vector<32x32xf32>, vector<16x32xf32> -> vector<16x32xf32>
    %c0_83 = arith.constant 0 : index
    %c0_84 = arith.constant 0 : index
    %212 = vector.load %arg18[%c0_83, %c0_84] : memref<1x32xf32, #tpu.memory_space<vmem>>, vector<1x32xf32>
    %213 = vector.broadcast %212 : vector<1x32xf32> to vector<16x32xf32>
    %214 = arith.addf %211, %213 : vector<16x32xf32>
    %215 = arith.addf %214, %106 : vector<16x32xf32>
    %c0_85 = arith.constant 0 : index
    %c0_86 = arith.constant 0 : index
    %216 = vector.load %arg19[%c0_85, %c0_86] : memref<1x32xf32, #tpu.memory_space<vmem>>, vector<1x32xf32>
    %c0_87 = arith.constant 0 : index
    %c0_88 = arith.constant 0 : index
    %217 = vector.load %arg20[%c0_87, %c0_88] : memref<1x32xf32, #tpu.memory_space<vmem>>, vector<1x32xf32>
    %cst_89 = arith.constant dense<0.000000e+00> : vector<16xf32>
    %218 = vector.multi_reduction <add>, %215, %cst_89 [1] : vector<16x32xf32> to vector<16xf32>
    %219 = vector.shape_cast %218 : vector<16xf32> to vector<16x1xf32>
    %cst_90 = arith.constant 3.200000e+01 : f32
    %220 = vector.broadcast %cst_90 : f32 to vector<16x1xf32>
    %221 = arith.divf %219, %220 : vector<16x1xf32>
    %222 = vector.broadcast %221 : vector<16x1xf32> to vector<16x32xf32>
    %223 = arith.subf %215, %222 : vector<16x32xf32>
    %224 = arith.mulf %223, %223 : vector<16x32xf32>
    %cst_91 = arith.constant dense<0.000000e+00> : vector<16xf32>
    %225 = vector.multi_reduction <add>, %224, %cst_91 [1] : vector<16x32xf32> to vector<16xf32>
    %226 = vector.shape_cast %225 : vector<16xf32> to vector<16x1xf32>
    %cst_92 = arith.constant 0.0322580636 : f32
    %227 = vector.broadcast %cst_92 : f32 to vector<16x1xf32>
    %228 = arith.mulf %226, %227 : vector<16x1xf32>
    %229 = math.sqrt %228 : vector<16x1xf32>
    %cst_93 = arith.constant 9.99999997E-7 : f32
    %230 = vector.broadcast %cst_93 : f32 to vector<16x1xf32>
    %231 = arith.addf %229, %230 : vector<16x1xf32>
    %232 = tpu.reciprocal %231 : vector<16x1xf32> -> vector<16x1xf32>
    %233 = vector.broadcast %232 : vector<16x1xf32> to vector<16x32xf32>
    %234 = arith.mulf %223, %233 : vector<16x32xf32>
    %235 = vector.broadcast %216 : vector<1x32xf32> to vector<16x32xf32>
    %236 = arith.mulf %234, %235 : vector<16x32xf32>
    %237 = vector.broadcast %217 : vector<1x32xf32> to vector<16x32xf32>
    %238 = arith.addf %236, %237 : vector<16x32xf32>
    %c0_94 = arith.constant 0 : index
    %c0_95 = arith.constant 0 : index
    %239 = vector.load %arg21[%c0_94, %c0_95] : memref<32x64xf32, #tpu.memory_space<vmem>>, vector<32x64xf32>
    %cst_96 = arith.constant dense<0.000000e+00> : vector<16x64xf32>
    %240 = tpu.matmul %238, %239, %cst_96 {dimension_numbers = #tpu.dot_dimension_numbers<[1], [0], [0], [1], [0, 0, 1, 1], [], []>} : vector<16x32xf32>, vector<32x64xf32>, vector<16x64xf32> -> vector<16x64xf32>
    %c0_97 = arith.constant 0 : index
    %c0_98 = arith.constant 0 : index
    %241 = vector.load %arg22[%c0_97, %c0_98] : memref<1x64xf32, #tpu.memory_space<vmem>>, vector<1x64xf32>
    %242 = vector.broadcast %241 : vector<1x64xf32> to vector<16x64xf32>
    %243 = arith.addf %240, %242 : vector<16x64xf32>
    %cst_99 = arith.constant 0.000000e+00 : f32
    %244 = vector.broadcast %cst_99 : f32 to vector<16x64xf32>
    %245 = arith.maximumf %243, %244 : vector<16x64xf32>
    %c0_100 = arith.constant 0 : index
    %c0_101 = arith.constant 0 : index
    %246 = vector.load %arg23[%c0_100, %c0_101] : memref<64x32xf32, #tpu.memory_space<vmem>>, vector<64x32xf32>
    %cst_102 = arith.constant dense<0.000000e+00> : vector<16x32xf32>
    %247 = tpu.matmul %245, %246, %cst_102 {dimension_numbers = #tpu.dot_dimension_numbers<[1], [0], [0], [1], [0, 0, 1, 1], [], []>} : vector<16x64xf32>, vector<64x32xf32>, vector<16x32xf32> -> vector<16x32xf32>
    %c0_103 = arith.constant 0 : index
    %c0_104 = arith.constant 0 : index
    %248 = vector.load %arg24[%c0_103, %c0_104] : memref<1x32xf32, #tpu.memory_space<vmem>>, vector<1x32xf32>
    %249 = vector.broadcast %248 : vector<1x32xf32> to vector<16x32xf32>
    %250 = arith.addf %247, %249 : vector<16x32xf32>
    %251 = arith.addf %250, %215 : vector<16x32xf32>
    %c0_105 = arith.constant 0 : index
    %c0_106 = arith.constant 0 : index
    %252 = vector.load %arg25[%c0_105, %c0_106] : memref<16x32xf32, #tpu.memory_space<vmem>>, vector<16x32xf32>
    tpu.vector_store %arg25[%c0_105, %c0_106], %251 {strides = array<i32>} : memref<16x32xf32, #tpu.memory_space<vmem>>, vector<16x32xf32>,
    return
  }
  func.func @transform_0(%arg0: i32) -> (i32, i32) {
    %c0_i32 = arith.constant 0 : i32
    %c0_i32_0 = arith.constant 0 : i32
    %c0_i32_1 = arith.constant 0 : i32
    return %c0_i32, %c0_i32_0 : i32, i32
  }
  func.func @transform_1(%arg0: i32) -> (i32, i32) {
    %c0_i32 = arith.constant 0 : i32
    %c0_i32_0 = arith.constant 0 : i32
    %c0_i32_1 = arith.constant 0 : i32
    return %c0_i32, %c0_i32_0 : i32, i32
  }
  func.func @transform_2(%arg0: i32) -> (i32, i32) {
    %c0_i32 = arith.constant 0 : i32
    %c0_i32_0 = arith.constant 0 : i32
    %c0_i32_1 = arith.constant 0 : i32
    return %c0_i32, %c0_i32_0 : i32, i32
  }
  func.func @transform_3(%arg0: i32) -> (i32, i32) {
    %c0_i32 = arith.constant 0 : i32
    %c0_i32_0 = arith.constant 0 : i32
    %c0_i32_1 = arith.constant 0 : i32
    return %c0_i32, %c0_i32_0 : i32, i32
  }
  func.func @transform_4(%arg0: i32) -> (i32, i32) {
    %c0_i32 = arith.constant 0 : i32
    %c0_i32_0 = arith.constant 0 : i32
    %c0_i32_1 = arith.constant 0 : i32
    return %c0_i32, %c0_i32_0 : i32, i32
  }
  func.func @transform_5(%arg0: i32) -> (i32, i32) {
    %c0_i32 = arith.constant 0 : i32
    %c0_i32_0 = arith.constant 0 : i32
    %c0_i32_1 = arith.constant 0 : i32
    return %c0_i32, %c0_i32_0 : i32, i32
  }
  func.func @transform_6(%arg0: i32) -> (i32, i32) {
    %c0_i32 = arith.constant 0 : i32
    %c0_i32_0 = arith.constant 0 : i32
    %c0_i32_1 = arith.constant 0 : i32
    return %c0_i32, %c0_i32_0 : i32, i32
  }
  func.func @transform_7(%arg0: i32) -> (i32, i32) {
    %c0_i32 = arith.constant 0 : i32
    %c0_i32_0 = arith.constant 0 : i32
    %c0_i32_1 = arith.constant 0 : i32
    return %c0_i32, %c0_i32_0 : i32, i32
  }
  func.func @transform_8(%arg0: i32) -> (i32, i32) {
    %c0_i32 = arith.constant 0 : i32
    %c0_i32_0 = arith.constant 0 : i32
    %c0_i32_1 = arith.constant 0 : i32
    return %c0_i32, %c0_i32_0 : i32, i32
  }
  func.func @transform_9(%arg0: i32) -> (i32, i32) {
    %c0_i32 = arith.constant 0 : i32
    %c0_i32_0 = arith.constant 0 : i32
    %c0_i32_1 = arith.constant 0 : i32
    return %c0_i32, %c0_i32_0 : i32, i32
  }
  func.func @transform_10(%arg0: i32) -> (i32, i32) {
    %c0_i32 = arith.constant 0 : i32
    %c0_i32_0 = arith.constant 0 : i32
    %c0_i32_1 = arith.constant 0 : i32
    return %c0_i32, %c0_i32_0 : i32, i32
  }
  func.func @transform_11(%arg0: i32) -> (i32, i32) {
    %c0_i32 = arith.constant 0 : i32
    %c0_i32_0 = arith.constant 0 : i32
    %c0_i32_1 = arith.constant 0 : i32
    return %c0_i32, %c0_i32_0 : i32, i32
  }
  func.func @transform_12(%arg0: i32) -> (i32, i32) {
    %c0_i32 = arith.constant 0 : i32
    %c0_i32_0 = arith.constant 0 : i32
    %c0_i32_1 = arith.constant 0 : i32
    return %c0_i32, %c0_i32_0 : i32, i32
  }
  func.func @transform_13(%arg0: i32) -> (i32, i32) {
    %c0_i32 = arith.constant 0 : i32
    %c0_i32_0 = arith.constant 0 : i32
    %c0_i32_1 = arith.constant 0 : i32
    return %c0_i32, %c0_i32_0 : i32, i32
  }
  func.func @transform_14(%arg0: i32) -> (i32, i32) {
    %c0_i32 = arith.constant 0 : i32
    %c0_i32_0 = arith.constant 0 : i32
    %c0_i32_1 = arith.constant 0 : i32
    return %c0_i32, %c0_i32_0 : i32, i32
  }
  func.func @transform_15(%arg0: i32) -> (i32, i32) {
    %c0_i32 = arith.constant 0 : i32
    %c0_i32_0 = arith.constant 0 : i32
    %c0_i32_1 = arith.constant 0 : i32
    return %c0_i32, %c0_i32_0 : i32, i32
  }
  func.func @transform_16(%arg0: i32) -> (i32, i32) {
    %c0_i32 = arith.constant 0 : i32
    %c0_i32_0 = arith.constant 0 : i32
    %c0_i32_1 = arith.constant 0 : i32
    return %c0_i32, %c0_i32_0 : i32, i32
  }
  func.func @transform_17(%arg0: i32) -> (i32, i32) {
    %c0_i32 = arith.constant 0 : i32
    %c0_i32_0 = arith.constant 0 : i32
    %c0_i32_1 = arith.constant 0 : i32
    return %c0_i32, %c0_i32_0 : i32, i32
  }
  func.func @transform_18(%arg0: i32) -> (i32, i32) {
    %c0_i32 = arith.constant 0 : i32
    %c0_i32_0 = arith.constant 0 : i32
    %c0_i32_1 = arith.constant 0 : i32
    return %c0_i32, %c0_i32_0 : i32, i32
  }
  func.func @transform_19(%arg0: i32) -> (i32, i32) {
    %c0_i32 = arith.constant 0 : i32
    %c0_i32_0 = arith.constant 0 : i32
    %c0_i32_1 = arith.constant 0 : i32
    return %c0_i32, %c0_i32_0 : i32, i32
  }
  func.func @transform_20(%arg0: i32) -> (i32, i32) {
    %c0_i32 = arith.constant 0 : i32
    %c0_i32_0 = arith.constant 0 : i32
    %c0_i32_1 = arith.constant 0 : i32
    return %c0_i32, %c0_i32_0 : i32, i32
  }
  func.func @transform_21(%arg0: i32) -> (i32, i32) {
    %c0_i32 = arith.constant 0 : i32
    %c0_i32_0 = arith.constant 0 : i32
    %c0_i32_1 = arith.constant 0 : i32
    return %c0_i32, %c0_i32_0 : i32, i32
  }
  func.func @transform_22(%arg0: i32) -> (i32, i32) {
    %c0_i32 = arith.constant 0 : i32
    %c0_i32_0 = arith.constant 0 : i32
    %c0_i32_1 = arith.constant 0 : i32
    return %c0_i32, %c0_i32_0 : i32, i32
  }
  func.func @transform_23(%arg0: i32) -> (i32, i32) {
    %c0_i32 = arith.constant 0 : i32
    %c0_i32_0 = arith.constant 0 : i32
    %c0_i32_1 = arith.constant 0 : i32
    return %c0_i32, %c0_i32_0 : i32, i32
  }
  func.func @transform_24(%arg0: i32) -> (i32, i32) {
    %c0_i32 = arith.constant 0 : i32
    %c0_i32_0 = arith.constant 0 : i32
    %c0_i32_1 = arith.constant 0 : i32
    return %c0_i32, %c0_i32_0 : i32, i32
  }
  func.func @transform_25(%arg0: i32) -> (i32, i32) {
    %c0_i32 = arith.constant 0 : i32
    %c0_i32_0 = arith.constant 0 : i32
    %c0_i32_1 = arith.constant 0 : i32
    return %c0_i32, %c0_i32_0 : i32, i32
  }
  func.func @transform_26(%arg0: i32) -> (i32, i32) {
    %c0_i32 = arith.constant 0 : i32
    %c0_i32_0 = arith.constant 0 : i32
    %c0_i32_1 = arith.constant 0 : i32
    return %c0_i32, %c0_i32_0 : i32, i32
  }
}

</mosaic_0001>

<bundles_post_ra>
// kernel: transformer_decoder_layer.1
= control target key start
LH: loop header
LB: loop body
LE: loop exit
PB: predicated region body
PF: predicated region fallthrough
CT: control target
= control target key end

     0   :  { %s4301_s0 = inlined_call_operand.vmem [shape: f32[16,32], index: 0, kind: input, shape index: {}]   ;;  %s4302_s1 = inlined_call_operand.vmem [shape: f32[32,32], index: 1, kind: input, shape index: {}]   ;;  %s4303_s2 = inlined_call_operand.vmem [shape: f32[16,16], index: 2, kind: input, shape index: {}]   ;;  %s4304_s3 = inlined_call_operand.vmem [shape: f32[16,32], index: 3, kind: input, shape index: {}]   ;;  %s4305_s4 = inlined_call_operand.vmem [shape: f32[1,32], index: 4, kind: input, shape index: {}]   ;;  %s4306_s5 = inlined_call_operand.vmem [shape: f32[1,32], index: 5, kind: input, shape index: {}]   ;;  %s4307_s6 = inlined_call_operand.vmem [shape: f32[32,96], index: 6, kind: input, shape index: {}]   ;;  %s4308_s7 = inlined_call_operand.vmem [shape: f32[1,96], index: 7, kind: input, shape index: {}]   ;;  %s4309_s8 = inlined_call_operand.vmem [shape: f32[32,32], index: 8, kind: input, shape index: {}]   ;;  %s4310_s9 = inlined_call_operand.vmem [shape: f32[1,32], index: 9, kind: input, shape index: {}]   ;;  %s4311_s10 = inlined_call_operand.vmem [shape: f32[1,32], index: 10, kind: input, shape index: {}]   ;;  %s4312_s11 = inlined_call_operand.vmem [shape: f32[1,32], index: 11, kind: input, shape index: {}]   ;;  %s4313_s12 = inlined_call_operand.vmem [shape: f32[32,32], index: 12, kind: input, shape index: {}]   ;;  %s4314_s13 = inlined_call_operand.vmem [shape: f32[1,32], index: 13, kind: input, shape index: {}]   ;;  %s4315_s14 = inlined_call_operand.vmem [shape: f32[32,64], index: 14, kind: input, shape index: {}]   ;;  %s4316_s15 = inlined_call_operand.vmem [shape: f32[1,64], index: 15, kind: input, shape index: {}]   ;;  %s4317_s16 = inlined_call_operand.vmem [shape: f32[32,32], index: 16, kind: input, shape index: {}]   ;;  %s4318_s17 = inlined_call_operand.vmem [shape: f32[1,32], index: 17, kind: input, shape index: {}]   ;;  %s4319_s18 = inlined_call_operand.vmem [shape: f32[1,32], index: 18, kind: input, shape index: {}]   ;;  %s4320_s19 = inlined_call_operand.vmem [shape: f32[1,32], index: 19, kind: input, shape index: {}]   ;;  %s4321_s20 = inlined_call_operand.vmem [shape: f32[32,64], index: 20, kind: input, shape index: {}]   ;;  %s4322_s21 = inlined_call_operand.vmem [shape: f32[1,64], index: 21, kind: input, shape index: {}]   ;;  %s4323_s22 = inlined_call_operand.vmem [shape: f32[64,32], index: 22, kind: input, shape index: {}]   ;;  %s4324_s23 = inlined_call_operand.vmem [shape: f32[1,32], index: 23, kind: input, shape index: {}]   ;;  %s4325_s24 = inlined_call_operand.hbm [shape: f32[16,32], index: 24, kind: output, shape index: {0}]   ;;  %s4326_s25 = inlined_call_operand.vmem [shape: f32[16,32], index: 25, kind: output, shape index: {1}]   ;;  %s4327_s26 = inlined_call_operand.hbm [shape: f32[16,32], index: 26, kind: output, shape index: {2}]  }
   0x1   :  { %4344 = sst [smem:[#allocation8_spill]] %s4301_s0 }
   0x2   :  { %4345 = sst [smem:[#allocation9_spill]] %s4302_s1 }
   0x3   :  { %4346 = sst [smem:[#allocation10_spill]] %s4303_s2 }
   0x4   :  { %4347 = sst [smem:[#allocation11_spill]] %s4304_s3 }
   0x5   :  { %4348 = sst [smem:[#allocation12_spill]] %s4305_s4 }
   0x6   :  { %4349 = sst [smem:[#allocation13_spill]] %s4306_s5 }
   0x7   :  { %4350 = sst [smem:[#allocation14_spill]] %s4307_s6 }
   0x8   :  { %4351 = sst [smem:[#allocation15_spill]] %s4308_s7 }
   0x9   :  { %4352 = sst [smem:[#allocation16_spill]] %s4309_s8 }
   0xa   :  { %4353 = sst [smem:[#allocation17_spill]] %s4310_s9 }
   0xb   :  { %4354 = sst [smem:[#allocation18_spill]] %s4311_s10 }
   0xc   :  { %32 = vsyncpa [#allocation3], 0  ;;  %s4355_s7 = sld [smem:[#allocation8_spill]]  ;;  %vm94_vm0 = vcmask 261120  }
  0x12   :  { %v3743_v0 = vld [vmem:[%s4355_s7] sm:$0xff]  ;;  %v3748_v1 = vld [vmem:[%s4355_s7 + $0x8] sm:$0xff] }
  0x13   :  { %33 = vsyncpa [#allocation5], 0  ;;  %v95_v2 = vsel %vm94_vm0, %v3743_v0, 0.0  ;;  %v98_v3 = vsel %vm94_vm0, %v3748_v1, 0.0  ;;  %s4356_s0 = sld [smem:[#allocation14_spill]]  ;;  %s4357_s3 = sld [smem:[#allocation12_spill]] }
  0x14   :  { %96 = vadd.xlane.f32.xlu0 %v95_v2  ;;  %s4358_s8 = sld [smem:[#allocation13_spill]]  ;;  %vm252_vm5 = vcmask 64512   ;;  %s3588_s9 = smov 88   ;;  %vm336_vm7 = vcmask 130048   ;;  %vm1074_vm8 = vcmask 195584  }
  0x15   :  { %s3589_s30 = smov 96   ;;  %s3590_s2 = smov 120   ;;  %vm3794_vm6 = vmpackc.low %vm252_vm5, %vm252_vm5 }
  0x16   :  { %s4362_s6 = sld [smem:[#allocation10_spill]]  ;;  %s3592_s7 = smov 80  }
  0x17   :  { %s4336_s28 = smov 72   ;;  %s4342_s4 = smov 104  }
  0x18   :  { %99 = vadd.xlane.f32.xlu0 %v98_v3  ;;  %s3596_s29 = smov 64   ;;  %s3598_s5 = smov 48  }
  0x19   :  { %v154_v14 = vld [vmem:[%s4356_s0] sm:$0xff]  ;;  %v155_v15 = vld [vmem:[%s4356_s0 + $0x8] sm:$0xff]  ;;  %v156_v16 = vld [vmem:[%s4356_s0 + $0x10] sm:$0xff]  ;;  %s4334_s10 = smov 8   ;;  %s4363_s27 = sld [smem:[#allocation16_spill]] }
  0x1a   :  { %v3141_v17 = vpack.c.bf16 %v155_v15, %v154_v14  ;;  %v157_v18 = vld [vmem:[%s4356_s0 + $0x18] sm:$0xff]  ;;  %v2696_v37 = vld [vmem:[%s4357_s3] ss:$0 sm:$0xff]  ;;  %s4359_s0 = sld [smem:[#allocation15_spill]]  ;;  %s3591_s3 = smov 56  }
  0x1b   :  { %v3145_v19 = vpack.c.bf16 %v157_v18, %v156_v16  ;;  %v2697_v39 = vld [vmem:[%s4358_s8] ss:$0 sm:$0xff]  ;;  %s3594_s8 = smov 112  }
  0x1c   :  { %3142 = vmatprep.subr.bf16.mxu0 %v3141_v17  ;;  %v3812_v63 = vld [vmem:[%s4362_s6 + $0x8] sm:$0xff]  ;;  %v3817_v2 = vld [vmem:[%s4362_s6] sm:$0xff]  ;;  %s4340_s6 = smov 16  }
  0x1d   :  { %3144 = vmatpush3.bf16.msra.mxu0 %v3141_v17 }
  0x1e   :  { %3146 = vmatprep.subr.bf16.mxu0 %v3145_v19 }
  0x20   :  { %v2698_v46 = vld [vmem:[%s4359_s0] ss:$0 sm:$0xff]  ;;  %s3597_s0 = smov 40  }
  0x21   :  { %3148 = vmatpush3.bf16.msra.mxu0 %v3145_v19 }
  0xa1   :  { %v97_v4 = vpop.xlane.xlu0 %96 }
  0xa2   :  { %v102_v5 = vmul.f32 0.03125, %v97_v4 }
  0xa4   :  { %v104_v6 = vsub.f32 %v3743_v0, %v102_v5 }
  0xa5   :  { %v100_v7 = vpop.xlane.xlu0 %99 }
  0xa6   :  { %v103_v8 = vmul.f32 0.03125, %v100_v7  ;;  %v106_v9 = vmul.f32 %v104_v6, %v104_v6 }
  0xa8   :  { %v105_v10 = vsub.f32 %v3748_v1, %v103_v8  ;;  %v108_v11 = vsel %vm94_vm0, %v106_v9, 0.0 }
  0xa9   :  { %109 = vadd.xlane.f32.xlu1 %v108_v11 }
  0xaa   :  { %v107_v12 = vmul.f32 %v105_v10, %v105_v10 }
  0xac   :  { %v111_v13 = vsel %vm94_vm0, %v107_v12, 0.0 }
  0xad   :  { %112 = vadd.xlane.f32.xlu1 %v111_v13 }
 0x136   :  { %v110_v20 = vpop.xlane.xlu1 %109 }
 0x137   :  { %v114_v21 = vmul.f32 0.032258064, %v110_v20 }
 0x139   :  { %3452 = vrsqrt.f32 %v114_v21  ;;  %vm118_vm1 = vcmp.eq.f32.partialorder %v114_v21, inf  ;;  %v121_v26 = vand.u32 2147483648, %v114_v21  ;;  %vm120_vm2 = vcmp.eq.f32.partialorder %v114_v21, 0.0 }
 0x13a   :  { %v113_v22 = vpop.xlane.xlu1 %112 }
 0x13b   :  { %v115_v23 = vmul.f32 0.032258064, %v113_v22 }
 0x13d   :  { %3454 = vrsqrt.f32 %v115_v23  ;;  %vm125_vm3 = vcmp.eq.f32.partialorder %v115_v23, inf  ;;  %v128_v32 = vand.u32 2147483648, %v115_v23  ;;  %vm127_vm4 = vcmp.eq.f32.partialorder %v115_v23, 0.0 }
 0x143   :  { %v3453_v24 = vpop.eup %3452 }
 0x144   :  { %v117_v25 = vmul.f32 %v3453_v24, %v114_v21 }
 0x146   :  { %v119_v27 = vsel %vm118_vm1, %v114_v21, %v117_v25 }
 0x147   :  { %v3455_v28 = vpop.eup %3454  ;;  %v122_v29 = vsel %vm120_vm2, %v121_v26, %v119_v27  ;;  %vm2574_vm2 = vcmask 523264  }
 0x148   :  { %v124_v30 = vmul.f32 %v3455_v28, %v115_v23  ;;  %v130_v31 = vadd.f32 1e-06, %v122_v29 }
 0x14a   :  { %v126_v33 = vsel %vm125_vm3, %v115_v23, %v124_v30  ;;  %3456 = vrcp.f32 %v130_v31 }
 0x14b   :  { %v129_v34 = vsel %vm127_vm4, %v128_v32, %v126_v33 }
 0x14c   :  { %v131_v35 = vadd.f32 1e-06, %v129_v34 }
 0x14e   :  { %3458 = vrcp.f32 %v131_v35 }
 0x154   :  { %v3457_v36 = vpop.eup %3456 }
 0x155   :  { %v134_v38 = vmul.f32 %v3457_v36, %v104_v6 }
 0x157   :  { %v142_v40 = vmul.f32 %v2696_v37, %v134_v38 }
 0x158   :  { %v3459_v41 = vpop.eup %3458 }
 0x159   :  { %v135_v42 = vmul.f32 %v3459_v41, %v105_v10  ;;  %v150_v43 = vadd.f32 %v2697_v39, %v142_v40 }
 0x15b   :  { %v143_v44 = vmul.f32 %v2696_v37, %v135_v42  ;;  %152 = vst.msk [vmem:[#allocation4] sm:$0xff] %vm94_vm0, %v150_v43  ;;  %2917 = vmatprep.mubr.msk.f32.mxu0 %vm94_vm0, %v150_v43 }
 0x15d   :  { %v151_v45 = vadd.f32 %v2697_v39, %v143_v44 }
 0x15f   :  { %153 = vst.msk [vmem:[#allocation4 + $0x8] sm:$0xff] %vm94_vm0, %v151_v45  ;;  %2918 = vmatmul.mubr.msk.f32.vlgmr.msra.gmra.mrb[0].mxu0 %vm94_vm0, %v151_v45 }
 0x232   :  { %v2919_v47 = vpop.f32.mrb[0].mxu0 }
 0x233   :  { %v243_v48 = vadd.f32 %v2919_v47, %v2698_v46  ;;  %v237_v49 = vpop.f32.mrb[1].mxu0 }
 0x234   :  { %v238_v50 = vadd.f32 %v2698_v46, %v237_v49 }
 0x236   :  { %2924 = vmatprep.mubr.msk.f32.mxu1 %vm252_vm5, %v238_v50  ;;  %v3784_v51 = vpack.i.bf16 %v243_v48, %v238_v50 }
 0x238   :  { %3348 = vrot.lane.b32.xlu1 %v3784_v51, %s3588_s9  ;;  %3343 = vrot.lane.b32.xlu0 %v3784_v51, %s3589_s30 }
 0x23c   :  { %446 = vrot.lane.b32.xlu1 %v238_v50, %s3590_s2 }
 0x240   :  { %448 = vrot.lane.b32.xlu1 %v243_v48, %s3590_s2 }
 0x2aa   :  { %v3349_v52 = vpop.permute.xlu1 %3348  ;;  %v3344_v53 = vpop.permute.xlu0 %3343 }
 0x2ab   :  { %v3351_v54 = vunpack.i.h.bf16 %v3349_v52  ;;  %v3350_v55 = vunpack.i.l.bf16 %v3349_v52  ;;  %v3346_v56 = vunpack.i.h.bf16 %v3344_v53  ;;  %v3345_v57 = vunpack.i.l.bf16 %v3344_v53 }
 0x2ad   :  { %v3149_v59 = vpack.c.bf16 %v3346_v56, %v3345_v57  ;;  %v3159_v60 = vpack.c.bf16 %v3351_v54, %v3350_v55 }
 0x2ae   :  { %v447_v61 = vpop.permute.xlu1 %446 }
 0x2af   :  { %3151 = vmatprep.subr.msk.bf16.mxu1 %vm3794_vm6, %v3149_v59 }
 0x2b0   :  { %3154 = vmatpush3.bf16.xpose.msk.msra.mxu1 %vm3794_vm6, %v3149_v59 }
 0x2b1   :  { %3161 = vmatprep.subr.msk.bf16.mxu1 %vm3794_vm6, %v3159_v60 }
 0x2b2   :  { %v449_v62 = vpop.permute.xlu1 %448 }
 0x2b7   :  { %2925 = vmatmul.mubr.msk.f32.vlgmr.msra.gmra.mrb[0].mxu1 %vm252_vm5, %v243_v48 }
 0x2b8   :  { %3164 = vmatpush3.bf16.xpose.msk.msra.mxu1 %vm3794_vm6, %v3159_v60  ;;  %2938 = vmatprep.mubr.msk.f32.mxu1 %vm252_vm5, %v447_v61 }
 0x2bf   :  { %2939 = vmatmul.mubr.msk.f32.vlgmr.msra.gmra.mrb[2].mxu1 %vm252_vm5, %v449_v62 }
 0x38a   :  { %v2926_v3 = vpop.f32.mrb[0].mxu1 }
 0x38b   :  { %v333_v4 = vadd.f32 %v2926_v3, %v3812_v63  ;;  %v327_v5 = vpop.f32.mrb[1].mxu1 }
 0x38c   :  { %v328_v6 = vadd.f32 %v327_v5, %v3817_v2 }
 0x38d   :  { %v340_v7 = vsel %vm336_vm7, %v333_v4, -inf }
 0x38e   :  { %341 = vmax.xlane.f32.xlu1 %v340_v7  ;;  %v337_v8 = vsel %vm336_vm7, %v328_v6, -inf }
 0x38f   :  { %338 = vmax.xlane.f32.xlu0 %v337_v8 }
 0x392   :  { %v2940_v9 = vpop.f32.mrb[2].mxu1 }
 0x393   :  { %v534_v10 = vadd.f32 %v2940_v9, %v3812_v63  ;;  %v528_v11 = vpop.f32.mrb[3].mxu1 }
 0x394   :  { %v529_v12 = vadd.f32 %v528_v11, %v3817_v2 }
 0x395   :  { %v540_v13 = vsel %vm336_vm7, %v534_v10, -inf }
 0x396   :  { %541 = vmax.xlane.f32.xlu0 %v540_v13  ;;  %v537_v14 = vsel %vm336_vm7, %v529_v12, -inf }
 0x39a   :  { %538 = vmax.xlane.f32.xlu0 %v537_v14 }
 0x39f   :  { %3358 = vrot.lane.b32.xlu1 %v3784_v51, %s3591_s3 }
 0x3a3   :  { %3363 = vrot.lane.b32.xlu1 %v3784_v51, %s3592_s7 }
 0x3a7   :  { %3368 = vrot.lane.b32.xlu1 %v3784_v51, %s4336_s28  ;;  %s4338_s28 = smov 24  }
 0x3ab   :  { %648 = vrot.lane.b32.xlu1 %v243_v48, %s3594_s8 }
 0x3af   :  { %848 = vrot.lane.b32.xlu1 %v243_v48, %s4342_s4 }
 0x3b0   :  { %3353 = vrot.lane.b32.xlu0 %v3784_v51, %s3596_s29  ;;  %s4372_s29 = smov 24  }
 0x3b4   :  { %646 = vrot.lane.b32.xlu0 %v238_v50, %s3594_s8 }
 0x3b8   :  { %846 = vrot.lane.b32.xlu0 %v238_v50, %s4342_s4 }
 0x41b   :  { %v342_v15 = vpop.xlane.xlu1 %341 }
 0x41c   :  { %v339_v16 = vpop.xlane.xlu0 %338  ;;  %v344_v20 = vsub.f32 %v333_v4, %v342_v15 }
 0x41d   :  { %v343_v17 = vsub.f32 %v328_v6, %v339_v16 }
 0x41e   :  { %v347_v23 = vmul.f32 1.442695, %v344_v20 }
 0x41f   :  { %v345_v18 = vmul.f32 1.442695, %v343_v17  ;;  %v3359_v19 = vpop.permute.xlu1 %3358 }
 0x420   :  { %v3361_v34 = vunpack.i.h.bf16 %v3359_v19  ;;  %v3360_v36 = vunpack.i.l.bf16 %v3359_v19 }
 0x421   :  { %3460 = vpow2.f32 %v345_v18 }
 0x422   :  { %3462 = vpow2.f32 %v347_v23  ;;  %v3165_v42 = vpack.c.bf16 %v3361_v34, %v3360_v36 }
 0x423   :  { %v3364_v21 = vpop.permute.xlu1 %3363  ;;  %v542_v22 = vpop.xlane.xlu0 %541 }
 0x424   :  { %v544_v24 = vsub.f32 %v534_v10, %v542_v22  ;;  %v3366_v43 = vunpack.i.h.bf16 %v3364_v21  ;;  %v3365_v44 = vunpack.i.l.bf16 %v3364_v21 }
 0x426   :  { %v547_v30 = vmul.f32 1.442695, %v544_v24  ;;  %v3169_v47 = vpack.c.bf16 %v3366_v43, %v3365_v44 }
 0x427   :  { %v3369_v25 = vpop.permute.xlu1 %3368  ;;  %v539_v26 = vpop.xlane.xlu0 %538 }
 0x428   :  { %v3371_v27 = vunpack.i.h.bf16 %v3369_v25  ;;  %v3370_v28 = vunpack.i.l.bf16 %v3369_v25  ;;  %v543_v29 = vsub.f32 %v529_v12, %v539_v26 }
 0x42a   :  { %v3179_v31 = vpack.c.bf16 %v3371_v27, %v3370_v28  ;;  %v545_v32 = vmul.f32 1.442695, %v543_v29 }
 0x42b   :  { %v3837_v33 = vpop.eup %3460  ;;  %v3354_v35 = vpop.permute.xlu0 %3353 }
 0x42c   :  { %3464 = vpow2.f32 %v545_v32  ;;  %v3356_v37 = vunpack.i.h.bf16 %v3354_v35  ;;  %v3355_v38 = vunpack.i.l.bf16 %v3354_v35  ;;  %2931 = vmatprep.mubr.msk.f32.mxu0 %vm336_vm7, %v3837_v33  ;;  %3181 = vmatprep.subr.msk.bf16.mxu1 %vm3794_vm6, %v3179_v31  ;;  %v649_v39 = vpop.permute.xlu1 %648  ;;  %v3845_v45 = vpop.eup %3462 }
 0x42d   :  { %3466 = vpow2.f32 %v547_v30  ;;  %3184 = vmatpush3.bf16.xpose.msk.msra.mxu1 %vm3794_vm6, %v3179_v31 }
 0x42e   :  { %v3155_v40 = vpack.c.bf16 %v3356_v37, %v3355_v38  ;;  %v352_v37 = vsel %vm336_vm7, %v3845_v45, 0.0  ;;  %v349_v38 = vsel %vm336_vm7, %v3837_v33, 0.0  ;;  %v1077_v33 = vld [vmem:[%s4363_s27] sm:$0xff] }
 0x42f   :  { %v647_v41 = vpop.permute.xlu0 %646 }
 0x430   :  { %3156 = vmatprep.subr.bf16.mxu0 %v3155_v40  ;;  %v849_v48 = vpop.permute.xlu1 %848 }
 0x431   :  { %3158 = vmatpush3.bf16.msra.mxu0 %v3155_v40 }
 0x432   :  { %3166 = vmatprep.subr.bf16.mxu0 %v3165_v42 }
 0x433   :  { %v847_v46 = vpop.permute.xlu0 %846 }
 0x434   :  { %2932 = vmatmul.mubr.msk.f32.vlgmr.msra.gmra.mrb[2].mxu0 %vm336_vm7, %v3845_v45  ;;  %2966 = vmatprep.mubr.msk.f32.mxu1 %vm252_vm5, %v847_v46 }
 0x435   :  { %3168 = vmatpush3.bf16.msra.mxu0 %v3165_v42  ;;  %2967 = vmatmul.mubr.msk.f32.vlgmr.msra.gmra.mrb[4].mxu1 %vm252_vm5, %v849_v48 }
 0x436   :  { %v3465_v49 = vpop.eup %3464  ;;  %3171 = vmatprep.subr.msk.bf16.mxu0 %vm3794_vm6, %v3169_v47 }
 0x437   :  { %v3467_v50 = vpop.eup %3466  ;;  %2945 = vmatprep.mubr.msk.f32.mxu0 %vm336_vm7, %v3465_v49  ;;  %v549_v9 = vsel %vm336_vm7, %v3465_v49, 0.0 }
 0x438   :  { %2946 = vmatmul.mubr.msk.f32.vlgmr.msra.gmra.mrb[4].mxu0 %vm336_vm7, %v3467_v50 }
 0x439   :  { %2952 = vmatprep.mubr.msk.f32.mxu0 %vm252_vm5, %v647_v41 }
 0x43e   :  { %3174 = vmatpush3.bf16.xpose.msk.msra.mxu0 %vm3794_vm6, %v3169_v47  ;;  %v1078_v47 = vld [vmem:[%s4363_s27 + $0x8] sm:$0xff] }
 0x43f   :  { %v3189_v48 = vpack.c.bf16 %v1078_v47, %v1077_v33 }
 0x445   :  { %2953 = vmatmul.mubr.msk.f32.vlgmr.msra.gmra.mrb[6].mxu0 %vm252_vm5, %v649_v39 }
 0x507   :  { %v3859_v52 = vpop.f32.mrb[2].mxu0 }
 0x508   :  { %v3861_v53 = vpop.f32.mrb[3].mxu0  ;;  %v2968_v54 = vpop.f32.mrb[4].mxu1 }
 0x509   :  { %v934_v55 = vadd.f32 %v2968_v54, %v3812_v63  ;;  %v928_v56 = vpop.f32.mrb[5].mxu1  ;;  %v1080_v54 = vld [vmem:[%s4363_s27 + $0x18] sm:$0xff] }
 0x50a   :  { %v929_v57 = vadd.f32 %v928_v56, %v3817_v2 }
 0x50b   :  { %v3865_v59 = vpop.f32.mrb[4].mxu0  ;;  %v940_v60 = vsel %vm336_vm7, %v934_v55, -inf }
 0x50c   :  { %941 = vmax.xlane.f32.xlu0 %v940_v60  ;;  %v3868_v61 = vpop.f32.mrb[5].mxu0  ;;  %v937_v62 = vsel %vm336_vm7, %v929_v57, -inf }
 0x510   :  { %938 = vmax.xlane.f32.xlu0 %v937_v62 }
 0x518   :  { %v2954_v3 = vpop.f32.mrb[6].mxu0 }
 0x519   :  { %v734_v4 = vadd.f32 %v2954_v3, %v3812_v63  ;;  %v728_v5 = vpop.f32.mrb[7].mxu0  ;;  %v552_v63 = vsel %vm336_vm7, %v3467_v50, 0.0  ;;  %v1079_v50 = vld [vmem:[%s4363_s27 + $0x10] sm:$0xff]  ;;  %s4364_s27 = sld [smem:[#allocation17_spill]] }
 0x51a   :  { %v729_v6 = vadd.f32 %v728_v5, %v3817_v2 }
 0x51b   :  { %v740_v7 = vsel %vm336_vm7, %v734_v4, -inf }
 0x51c   :  { %741 = vmax.xlane.f32.xlu1 %v740_v7  ;;  %v737_v8 = vsel %vm336_vm7, %v729_v6, -inf }
 0x51d   :  { %738 = vmax.xlane.f32.xlu0 %v737_v8 }
 0x52d   :  { %3378 = vrot.lane.b32.xlu1 %v3784_v51, %s3597_s0 }
 0x533   :  { %3373 = vrot.lane.b32.xlu0 %v3784_v51, %s3598_s5  ;;  %s4367_s5 = sld [smem:[#allocation11_spill]] }
 0x551   :  { %550 = vadd.xlane.f32.xlu1 %v549_v9 }
 0x552   :  { %553 = vadd.xlane.f32.xlu0 %v552_v63 }
 0x599   :  { %v942_v10 = vpop.xlane.xlu0 %941 }
 0x59a   :  { %v944_v11 = vsub.f32 %v934_v55, %v942_v10  ;;  %v3193_v55 = vpack.c.bf16 %v1080_v54, %v1079_v50  ;;  %v1229_v50 = vld [vmem:[%s4313_s12] sm:$0xff]  ;;  %v1230_v54 = vld [vmem:[%s4313_s12 + $0x8] sm:$0xff] }
 0x59c   :  { %v947_v17 = vmul.f32 1.442695, %v944_v11 }
 0x59d   :  { %v939_v2 = vpop.xlane.xlu0 %938 }
 0x59e   :  { %v943_v12 = vsub.f32 %v929_v57, %v939_v2 }
 0x5a0   :  { %v945_v19 = vmul.f32 1.442695, %v943_v12 }
 0x5a9   :  { %v742_v13 = vpop.xlane.xlu1 %741 }
 0x5aa   :  { %v744_v14 = vsub.f32 %v734_v4, %v742_v13  ;;  %v739_v15 = vpop.xlane.xlu0 %738 }
 0x5ab   :  { %v743_v16 = vsub.f32 %v729_v6, %v739_v15 }
 0x5ac   :  { %v747_v18 = vmul.f32 1.442695, %v744_v14 }
 0x5ad   :  { %v745_v20 = vmul.f32 1.442695, %v743_v16  ;;  %v3379_v21 = vpop.permute.xlu1 %3378 }
 0x5ae   :  { %3468 = vpow2.f32 %v747_v18  ;;  %v3381_v51 = vunpack.i.h.bf16 %v3379_v21  ;;  %v3374_v22 = vpop.permute.xlu0 %3373  ;;  %v3380_v23 = vunpack.i.l.bf16 %v3379_v21 }
 0x5af   :  { %3470 = vpow2.f32 %v745_v20  ;;  %v3376_v24 = vunpack.i.h.bf16 %v3374_v22  ;;  %v3375_v25 = vunpack.i.l.bf16 %v3374_v22 }
 0x5b0   :  { %3472 = vpow2.f32 %v947_v17  ;;  %v3185_v27 = vpack.c.bf16 %v3381_v51, %v3380_v23 }
 0x5b1   :  { %3474 = vpow2.f32 %v945_v19  ;;  %v3175_v26 = vpack.c.bf16 %v3376_v24, %v3375_v25 }
 0x5b3   :  { %3176 = vmatprep.subr.bf16.mxu0 %v3175_v26 }
 0x5b4   :  { %3178 = vmatpush3.bf16.msra.mxu0 %v3175_v26 }
 0x5b5   :  { %3186 = vmatprep.subr.bf16.mxu0 %v3185_v27 }
 0x5b8   :  { %v3469_v28 = vpop.eup %3468 }
 0x5b9   :  { %v3471_v29 = vpop.eup %3470  ;;  %v752_v30 = vsel %vm336_vm7, %v3469_v28, 0.0 }
 0x5ba   :  { %v3473_v31 = vpop.eup %3472  ;;  %753 = vadd.xlane.f32.xlu1 %v752_v30  ;;  %2959 = vmatprep.mubr.msk.f32.mxu0 %vm336_vm7, %v3471_v29  ;;  %v749_v32 = vsel %vm336_vm7, %v3471_v29, 0.0 }
 0x5bb   :  { %v3475_v34 = vpop.eup %3474  ;;  %750 = vadd.xlane.f32.xlu0 %v749_v32  ;;  %2960 = vmatmul.mubr.msk.f32.vlgmr.msra.gmra.mrb[8].mxu0 %vm336_vm7, %v3469_v28  ;;  %v952_v35 = vsel %vm336_vm7, %v3473_v31, 0.0 }
 0x5bc   :  { %3188 = vmatpush3.bf16.msra.mxu0 %v3185_v27  ;;  %2973 = vmatprep.mubr.msk.f32.mxu0 %vm336_vm7, %v3475_v34  ;;  %v949_v36 = vsel %vm336_vm7, %v3475_v34, 0.0 }
 0x5bd   :  { %3190 = vmatprep.subr.bf16.mxu0 %v3189_v48 }
 0x5be   :  { %953 = vadd.xlane.f32.xlu1 %v952_v35 }
 0x5bf   :  { %950 = vadd.xlane.f32.xlu0 %v949_v36  ;;  %2974 = vmatmul.mubr.msk.f32.vlgmr.msra.gmra.mrb[10].mxu0 %vm336_vm7, %v3473_v31 }
 0x5c0   :  { %3192 = vmatpush3.bf16.msra.mxu0 %v3189_v48 }
 0x5c1   :  { %3194 = vmatprep.subr.bf16.mxu0 %v3193_v55 }
 0x5c2   :  { %353 = vadd.xlane.f32.xlu1 %v352_v37 }
 0x5c3   :  { %350 = vadd.xlane.f32.xlu0 %v349_v38 }
 0x5c4   :  { %3196 = vmatpush3.bf16.msra.mxu0 %v3193_v55  ;;  %v1231_v55 = vld [vmem:[%s4313_s12 + $0x10] sm:$0xff] }
 0x5de   :  { %v551_v39 = vpop.xlane.xlu1 %550 }
 0x5df   :  { %3476 = vrcp.f32 %v551_v39  ;;  %v554_v40 = vpop.xlane.xlu0 %553 }
 0x5e0   :  { %3478 = vrcp.f32 %v554_v40 }
 0x5e9   :  { %v3477_v41 = vpop.eup %3476 }
 0x5ea   :  { %v3479_v42 = vpop.eup %3478  ;;  %v644_v43 = vmul.f32 %v3477_v41, %v3868_v61  ;;  %v1321_v41 = vld [vmem:[%s4315_s14] sm:$0xff] }
 0x5eb   :  { %v645_v44 = vmul.f32 %v3479_v42, %v3865_v59  ;;  %v1322_v42 = vld [vmem:[%s4315_s14 + $0x8] sm:$0xff] }
 0x5ec   :  { %1048 = vrot.lane.b32.xlu0 %v644_v43, %s4334_s10  ;;  %v3205_v43 = vpack.c.bf16 %v1322_v42, %v1321_v41  ;;  %v4025_v41 = vld [vmem:[%s4367_s5] sm:$0xff] }
 0x5ed   :  { %1050 = vrot.lane.b32.xlu1 %v645_v44, %s4334_s10  ;;  %v1323_v44 = vld [vmem:[%s4315_s14 + $0x10] sm:$0xff] }
 0x5ee   :  { %3206 = vmatprep.subr.bf16.mxu0 %v3205_v43 }
 0x647   :  { %v754_v46 = vpop.xlane.xlu1 %753 }
 0x648   :  { %v751_v45 = vpop.xlane.xlu0 %750  ;;  %3480 = vrcp.f32 %v754_v46 }
 0x649   :  { %3482 = vrcp.f32 %v751_v45  ;;  %v1324_v45 = vld [vmem:[%s4315_s14 + $0x18] sm:$0xff] }
 0x64a   :  { %v3209_v46 = vpack.c.bf16 %v1324_v45, %v1323_v44 }
 0x64b   :  { %v954_v56 = vpop.xlane.xlu1 %953 }
 0x64c   :  { %v951_v49 = vpop.xlane.xlu0 %950 }
 0x64d   :  { %3484 = vrcp.f32 %v951_v49 }
 0x64e   :  { %3486 = vrcp.f32 %v954_v56  ;;  %v1232_v56 = vld [vmem:[%s4313_s12 + $0x18] sm:$0xff] }
 0x64f   :  { %v354_v10 = vpop.xlane.xlu1 %353 }
 0x650   :  { %v351_v63 = vpop.xlane.xlu0 %350 }
 0x651   :  { %3488 = vrcp.f32 %v351_v63 }
 0x652   :  { %v3481_v57 = vpop.eup %3480  ;;  %3490 = vrcp.f32 %v354_v10 }
 0x653   :  { %v3483_v62 = vpop.eup %3482 }
 0x657   :  { %v3485_v4 = vpop.eup %3484 }
 0x658   :  { %v3487_v8 = vpop.eup %3486 }
 0x65b   :  { %v3489_v11 = vpop.eup %3488 }
 0x65c   :  { %v444_v12 = vmul.f32 %v3489_v11, %v3861_v53  ;;  %v3491_v15 = vpop.eup %3490 }
 0x65d   :  { %v445_v18 = vmul.f32 %v3491_v15, %v3859_v52  ;;  %v2725_v52 = vld [vmem:[%s4364_s27] ss:$0 sm:$0xff] }
 0x65e   :  { %v1049_v14 = vpop.permute.xlu0 %1048 }
 0x65f   :  { %v1051_v2 = vpop.permute.xlu1 %1050  ;;  %v1070_v16 = vsel %vm252_vm5, %v444_v12, %v1049_v14 }
 0x660   :  { %v1071_v51 = vsel %vm252_vm5, %v445_v18, %v1051_v2 }
 0x68e   :  { %v2961_v59 = vpop.f32.mrb[8].mxu0 }
 0x68f   :  { %v845_v60 = vmul.f32 %v3481_v57, %v2961_v59  ;;  %v835_v61 = vpop.f32.mrb[9].mxu0  ;;  %v3197_v57 = vpack.c.bf16 %v1230_v54, %v1229_v50  ;;  %v3201_v59 = vpack.c.bf16 %v1232_v56, %v1231_v55 }
 0x690   :  { %v844_v5 = vmul.f32 %v3483_v62, %v835_v61 }
 0x691   :  { %1058 = vrot.lane.b32.xlu1 %v845_v60, %s4340_s6  ;;  %3198 = vmatprep.subr.bf16.mxu1 %v3197_v57 }
 0x692   :  { %v2975_v3 = vpop.f32.mrb[10].mxu0  ;;  %3200 = vmatpush3.bf16.msra.mxu1 %v3197_v57 }
 0x693   :  { %v1035_v6 = vpop.f32.mrb[11].mxu0  ;;  %v1045_v9 = vmul.f32 %v3487_v8, %v2975_v3  ;;  %3202 = vmatprep.subr.bf16.mxu1 %v3201_v59 }
 0x694   :  { %v1044_v7 = vmul.f32 %v3485_v4, %v1035_v6 }
 0x695   :  { %1056 = vrot.lane.b32.xlu1 %v844_v5, %s4340_s6  ;;  %s4365_s6 = sld [smem:[#allocation9_spill]] }
 0x696   :  { %1064 = vrot.lane.b32.xlu0 %v1044_v7, %s4338_s28  ;;  %3204 = vmatpush3.bf16.msra.mxu1 %v3201_v59 }
 0x699   :  { %1066 = vrot.lane.b32.xlu1 %v1045_v9, %s4338_s28 }
 0x69b   :  { %v84_v33 = vld [vmem:[%s4365_s6] sm:$0xff]  ;;  %v85_v47 = vld [vmem:[%s4365_s6 + $0x8] sm:$0xff]  ;;  %v86_v48 = vld [vmem:[%s4365_s6 + $0x10] sm:$0xff] }
 0x69c   :  { %v87_v49 = vld [vmem:[%s4365_s6 + $0x18] sm:$0xff]  ;;  %s4366_s6 = sld [smem:[#allocation18_spill]] }
 0x6a2   :  { %v2728_v15 = vld [vmem:[%s4366_s6] ss:$0 sm:$0xff] }
 0x703   :  { %v1059_v13 = vpop.permute.xlu1 %1058 }
 0x704   :  { %v1073_v53 = vsel %vm336_vm7, %v1071_v51, %v1059_v13 }
 0x707   :  { %v1057_v17 = vpop.permute.xlu1 %1056 }
 0x708   :  { %v1072_v19 = vsel %vm336_vm7, %v1070_v16, %v1057_v17  ;;  %v1065_v20 = vpop.permute.xlu0 %1064  ;;  %v2729_v17 = vld [vmem:[%s4312_s11] ss:$0 sm:$0xff] }
 0x709   :  { %v1075_v21 = vsel %vm1074_vm8, %v1072_v19, %v1065_v20 }
 0x70a   :  { %2984 = vmatprep.mubr.msk.f32.mxu0 %vm94_vm0, %v1075_v21 }
 0x70b   :  { %v1067_v22 = vpop.permute.xlu1 %1066 }
 0x70c   :  { %v1076_v23 = vsel %vm1074_vm8, %v1073_v53, %v1067_v22  ;;  %v2733_v22 = vld [vmem:[%s4316_s15] ss:$0 sm:$0xff] }
 0x70d   :  { %2985 = vmatmul.mubr.msk.f32.vlgmr.msra.gmra.mrb[12].mxu0 %vm94_vm0, %v1076_v23 }
 0x70e   :  { %3208 = vmatpush3.bf16.msra.mxu0 %v3205_v43  ;;  %3006 = vmatprep.mubr.msk.f32.mxu0 %vm94_vm0, %v84_v33 }
 0x70f   :  { %3210 = vmatprep.subr.bf16.mxu0 %v3209_v46 }
 0x712   :  { %3212 = vmatpush3.bf16.msra.mxu0 %v3209_v46 }
 0x715   :  { %3007 = vmatmul.mubr.msk.f32.vlgmr.msra.gmra.mrb[14].mxu0 %vm94_vm0, %v85_v47 }
 0x716   :  { %3009 = vmatprep.mubr.msk.f32.mxu0 %vm94_vm0, %v86_v48 }
 0x719   :  { %3010 = vmatmul.mubr.msk.f32.gmra.mrb[16].mxu0 %vm94_vm0, %v87_v49 }
 0x7e0   :  { %v2986_v24 = vpop.f32.mrb[12].mxu0 }
 0x7e1   :  { %v1166_v25 = vadd.f32 %v2986_v24, %v2725_v52  ;;  %v1160_v26 = vpop.f32.mrb[13].mxu0 }
 0x7e2   :  { %v1161_v27 = vadd.f32 %v2725_v52, %v1160_v26 }
 0x7e3   :  { %v3925_v28 = vadd.f32 %v1166_v25, %v3748_v1 }
 0x7e4   :  { %v3928_v29 = vadd.f32 %v1161_v27, %v3743_v0 }
 0x7e5   :  { %v1176_v30 = vsel %vm94_vm0, %v3925_v28, 0.0 }
 0x7e6   :  { %1177 = vadd.xlane.f32.xlu1 %v1176_v30  ;;  %v1173_v31 = vsel %vm94_vm0, %v3928_v29, 0.0 }
 0x7e7   :  { %1174 = vadd.xlane.f32.xlu0 %v1173_v31 }
 0x7e8   :  { %v3008_v23 = vpop.f32.mrb[14].mxu0 }
 0x7e9   :  { %v1416_v52 = vadd.f32 %v3008_v23, %v2733_v22  ;;  %v1410_v24 = vpop.f32.mrb[15].mxu0 }
 0x7ea   :  { %v1411_v25 = vadd.f32 %v2733_v22, %v1410_v24 }
 0x7ec   :  { %v3213_v26 = vpack.c.bf16 %v1416_v52, %v1411_v25  ;;  %v3011_v27 = vpop.f32.mrb[16].mxu0 }
 0x7ed   :  { %v1426_v30 = vadd.f32 %v3011_v27, %v2733_v22  ;;  %v1420_v31 = vpop.f32.mrb[17].mxu0 }
 0x7ee   :  { %3215 = vmatprep.subr.msk.bf16.mxu1 %vm3794_vm6, %v3213_v26 }
 0x873   :  { %v1178_v32 = vpop.xlane.xlu1 %1177 }
 0x874   :  { %v1180_v34 = vmul.f32 0.03125, %v1178_v32  ;;  %v1175_v35 = vpop.xlane.xlu0 %1174  ;;  %v3994_v32 = vpack.i.bf16 %v1416_v52, %v1411_v25 }
 0x875   :  { %v1179_v36 = vmul.f32 0.03125, %v1175_v35 }
 0x876   :  { %v3935_v37 = vsub.f32 %v3925_v28, %v1180_v34  ;;  %v1421_v34 = vadd.f32 %v2733_v22, %v1420_v31 }
 0x877   :  { %v1181_v1 = vsub.f32 %v3928_v29, %v1179_v36 }
 0x878   :  { %v1184_v39 = vmul.f32 %v3935_v37, %v3935_v37  ;;  %v3219_v35 = vpack.c.bf16 %v1426_v30, %v1421_v34  ;;  %v4002_v36 = vpack.i.bf16 %v1426_v30, %v1421_v34 }
 0x879   :  { %v1183_v38 = vmul.f32 %v1181_v1, %v1181_v1 }
 0x87a   :  { %v1188_v40 = vsel %vm94_vm0, %v1184_v39, 0.0 }
 0x87b   :  { %v1185_v0 = vsel %vm94_vm0, %v1183_v38, 0.0 }
 0x87c   :  { %1186 = vadd.xlane.f32.xlu0 %v1185_v0 }
 0x880   :  { %1189 = vadd.xlane.f32.xlu0 %v1188_v40  ;;  %v4020_v40 = vld [vmem:[%s4367_s5 + $0x8] sm:$0xff] }
 0x909   :  { %v1187_v60 = vpop.xlane.xlu0 %1186 }
 0x90a   :  { %v1191_v61 = vmul.f32 0.032258064, %v1187_v60 }
 0x90c   :  { %3492 = vrsqrt.f32 %v1191_v61  ;;  %vm1195_vm9 = vcmp.eq.f32.partialorder %v1191_v61, inf  ;;  %v1198_v6 = vand.u32 2147483648, %v1191_v61  ;;  %vm1197_vm10 = vcmp.eq.f32.partialorder %v1191_v61, 0.0 }
 0x90d   :  { %v1190_v62 = vpop.xlane.xlu0 %1189 }
 0x90e   :  { %v1192_v3 = vmul.f32 0.032258064, %v1190_v62 }
 0x910   :  { %3494 = vrsqrt.f32 %v1192_v3  ;;  %vm1202_vm11 = vcmp.eq.f32.partialorder %v1192_v3, inf  ;;  %v1205_v2 = vand.u32 2147483648, %v1192_v3  ;;  %vm1204_vm12 = vcmp.eq.f32.partialorder %v1192_v3, 0.0 }
 0x916   :  { %v3493_v4 = vpop.eup %3492 }
 0x917   :  { %v1194_v5 = vmul.f32 %v3493_v4, %v1191_v61 }
 0x919   :  { %v1196_v7 = vsel %vm1195_vm9, %v1191_v61, %v1194_v5 }
 0x91a   :  { %v3495_v8 = vpop.eup %3494  ;;  %v1199_v9 = vsel %vm1197_vm10, %v1198_v6, %v1196_v7 }
 0x91b   :  { %v1207_v63 = vadd.f32 1e-06, %v1199_v9  ;;  %v1201_v10 = vmul.f32 %v3495_v8, %v1192_v3 }
 0x91d   :  { %3496 = vrcp.f32 %v1207_v63  ;;  %v1203_v11 = vsel %vm1202_vm11, %v1192_v3, %v1201_v10 }
 0x91e   :  { %v1206_v12 = vsel %vm1204_vm12, %v1205_v2, %v1203_v11 }
 0x91f   :  { %v1208_v13 = vadd.f32 1e-06, %v1206_v12 }
 0x921   :  { %3498 = vrcp.f32 %v1208_v13 }
 0x927   :  { %v3497_v14 = vpop.eup %3496 }
 0x928   :  { %v1211_v16 = vmul.f32 %v3497_v14, %v1181_v1 }
 0x92a   :  { %v1219_v18 = vmul.f32 %v2728_v15, %v1211_v16 }
 0x92b   :  { %v3499_v19 = vpop.eup %3498 }
 0x92c   :  { %v1212_v20 = vmul.f32 %v3499_v19, %v3935_v37  ;;  %v1227_v21 = vadd.f32 %v2729_v17, %v1219_v18  ;;  %v2730_v37 = vld [vmem:[%s4314_s13] ss:$0 sm:$0xff]  ;;  %s4368_s13 = smov 104  }
 0x92e   :  { %v1220_v51 = vmul.f32 %v2728_v15, %v1212_v20  ;;  %2995 = vmatprep.mubr.msk.f32.mxu1 %vm94_vm0, %v1227_v21 }
 0x930   :  { %v1228_v53 = vadd.f32 %v2729_v17, %v1220_v51 }
 0x932   :  { %2996 = vmatmul.mubr.msk.f32.vlgmr.msra.gmra.mrb[6].mxu1 %vm94_vm0, %v1228_v53 }
 0x933   :  { %3218 = vmatpush3.bf16.xpose.msk.msra.mxu1 %vm3794_vm6, %v3213_v26 }
 0x934   :  { %3221 = vmatprep.subr.msk.bf16.mxu1 %vm3794_vm6, %v3219_v35 }
 0x93b   :  { %3224 = vmatpush3.bf16.xpose.msk.msra.mxu1 %vm3794_vm6, %v3219_v35 }
 0xa05   :  { %v2997_v1 = vpop.f32.mrb[6].mxu1 }
 0xa06   :  { %v1312_v38 = vpop.f32.mrb[7].mxu1  ;;  %v4011_v39 = vadd.f32 %v2997_v1, %v2730_v37 }
 0xa07   :  { %v4009_v0 = vadd.f32 %v2730_v37, %v1312_v38 }
 0xa09   :  { %3020 = vmatprep.mubr.msk.f32.mxu1 %vm252_vm5, %v4009_v0 }
 0xa0a   :  { %3021 = vmatmul.mubr.msk.f32.vlgmr.msra.gmra.mrb[8].mxu1 %vm252_vm5, %v4011_v39 }
 0xadd   :  { %v3022_v42 = vpop.f32.mrb[8].mxu1 }
 0xade   :  { %v1519_v43 = vadd.f32 %v3022_v42, %v4020_v40  ;;  %v1513_v44 = vpop.f32.mrb[9].mxu1 }
 0xadf   :  { %v1514_v45 = vadd.f32 %v1513_v44, %v4025_v41 }
 0xae0   :  { %v1525_v46 = vsel %vm94_vm0, %v1519_v43, -inf }
 0xae1   :  { %1526 = vmax.xlane.f32.xlu1 %v1525_v46  ;;  %v1522_v33 = vsel %vm94_vm0, %v1514_v45, -inf }
 0xae2   :  { %1523 = vmax.xlane.f32.xlu0 %v1522_v33 }
 0xaf2   :  { %3388 = vrot.lane.b32.xlu1 %v4002_v36, %s3589_s30 }
 0xaf6   :  { %3393 = vrot.lane.b32.xlu1 %v3994_v32, %s3590_s2 }
 0xaf8   :  { %3383 = vrot.lane.b32.xlu0 %v3994_v32, %s3589_s30  ;;  %s4370_s30 = smov 8  }
 0xafa   :  { %3398 = vrot.lane.b32.xlu1 %v4002_v36, %s3590_s2 }
 0xafc   :  { %1639 = vrot.lane.b32.xlu0 %v4009_v0, %s3590_s2 }
 0xafe   :  { %1641 = vrot.lane.b32.xlu1 %v4011_v39, %s3590_s2  ;;  %s4371_s2 = smov 16  }
 0xb00   :  { %3403 = vrot.lane.b32.xlu0 %v3994_v32, %s3588_s9 }
 0xb02   :  { %3408 = vrot.lane.b32.xlu1 %v4002_v36, %s3588_s9  ;;  %s4369_s9 = smov 72  }
 0xb6e   :  { %v1527_v47 = vpop.xlane.xlu1 %1526 }
 0xb6f   :  { %v1529_v48 = vsub.f32 %v1519_v43, %v1527_v47  ;;  %v1524_v49 = vpop.xlane.xlu0 %1523 }
 0xb70   :  { %v1528_v50 = vsub.f32 %v1514_v45, %v1524_v49 }
 0xb71   :  { %v1532_v54 = vmul.f32 1.442695, %v1529_v48 }
 0xb72   :  { %v1530_v55 = vmul.f32 1.442695, %v1528_v50  ;;  %v3389_v56 = vpop.permute.xlu1 %3388 }
 0xb73   :  { %v3391_v57 = vunpack.i.h.bf16 %v3389_v56  ;;  %v3384_v59 = vpop.permute.xlu0 %3383  ;;  %v3390_v60 = vunpack.i.l.bf16 %v3389_v56 }
 0xb74   :  { %3500 = vpow2.f32 %v1530_v55  ;;  %v3386_v61 = vunpack.i.h.bf16 %v3384_v59  ;;  %v3385_v62 = vunpack.i.l.bf16 %v3384_v59 }
 0xb75   :  { %3502 = vpow2.f32 %v1532_v54  ;;  %v3229_v6 = vpack.c.bf16 %v3391_v57, %v3390_v60 }
 0xb76   :  { %v3225_v3 = vpack.c.bf16 %v3386_v61, %v3385_v62  ;;  %v3394_v4 = vpop.permute.xlu1 %3393 }
 0xb77   :  { %v1640_v5 = vpop.permute.xlu0 %1639  ;;  %v3396_v7 = vunpack.i.h.bf16 %v3394_v4  ;;  %v3395_v8 = vunpack.i.l.bf16 %v3394_v4 }
 0xb78   :  { %3226 = vmatprep.subr.bf16.mxu0 %v3225_v3 }
 0xb79   :  { %3228 = vmatpush3.bf16.msra.mxu0 %v3225_v3  ;;  %v3233_v10 = vpack.c.bf16 %v3396_v7, %v3395_v8 }
 0xb7a   :  { %v3399_v9 = vpop.permute.xlu1 %3398  ;;  %3230 = vmatprep.subr.bf16.mxu0 %v3229_v6 }
 0xb7b   :  { %v3404_v63 = vpop.permute.xlu0 %3403  ;;  %v3401_v16 = vunpack.i.h.bf16 %v3399_v9  ;;  %v3400_v17 = vunpack.i.l.bf16 %v3399_v9 }
 0xb7c   :  { %v3406_v2 = vunpack.i.h.bf16 %v3404_v63  ;;  %v3405_v11 = vunpack.i.l.bf16 %v3404_v63 }
 0xb7d   :  { %3232 = vmatpush3.bf16.msra.mxu0 %v3229_v6  ;;  %v3239_v21 = vpack.c.bf16 %v3401_v16, %v3400_v17 }
 0xb7e   :  { %v4047_v12 = vpop.eup %3500  ;;  %v3245_v13 = vpack.c.bf16 %v3406_v2, %v3405_v11  ;;  %v1642_v14 = vpop.permute.xlu1 %1641  ;;  %3235 = vmatprep.subr.msk.bf16.mxu0 %vm3794_vm6, %v3233_v10 }
 0xb7f   :  { %v4051_v15 = vpop.eup %3502  ;;  %3031 = vmatprep.mubr.msk.f32.mxu0 %vm94_vm0, %v4047_v12 }
 0xb80   :  { %3032 = vmatmul.mubr.msk.f32.vlgmr.msra.gmra.mrb[18].mxu0 %vm94_vm0, %v4051_v15  ;;  %3246 = vmatprep.subr.bf16.mxu1 %v3245_v13 }
 0xb81   :  { %3042 = vmatprep.mubr.msk.f32.mxu0 %vm252_vm5, %v1640_v5  ;;  %3248 = vmatpush3.bf16.msra.mxu1 %v3245_v13 }
 0xb82   :  { %v3409_v18 = vpop.permute.xlu1 %3408 }
 0xb83   :  { %v3411_v19 = vunpack.i.h.bf16 %v3409_v18  ;;  %v3410_v20 = vunpack.i.l.bf16 %v3409_v18 }
 0xb85   :  { %v3249_v51 = vpack.c.bf16 %v3411_v19, %v3410_v20 }
 0xb86   :  { %3238 = vmatpush3.bf16.xpose.msk.msra.mxu0 %vm3794_vm6, %v3233_v10 }
 0xb87   :  { %3241 = vmatprep.subr.msk.bf16.mxu0 %vm3794_vm6, %v3239_v21  ;;  %3250 = vmatprep.subr.bf16.mxu1 %v3249_v51 }
 0xb88   :  { %3252 = vmatpush3.bf16.msra.mxu1 %v3249_v51 }
 0xb8e   :  { %3244 = vmatpush3.bf16.xpose.msk.msra.mxu0 %vm3794_vm6, %v3239_v21 }
 0xb95   :  { %3043 = vmatmul.mubr.msk.f32.vlgmr.msra.gmra.mrb[20].mxu0 %vm252_vm5, %v1642_v14 }
 0xc53   :  { %v4065_v53 = vpop.f32.mrb[18].mxu0 }
 0xc54   :  { %v4067_v22 = vpop.f32.mrb[19].mxu0 }
 0xc68   :  { %v3044_v23 = vpop.f32.mrb[20].mxu0 }
 0xc69   :  { %v1735_v52 = vadd.f32 %v3044_v23, %v4020_v40  ;;  %v1729_v24 = vpop.f32.mrb[21].mxu0 }
 0xc6a   :  { %v1730_v25 = vadd.f32 %v1729_v24, %v4025_v41 }
 0xc6b   :  { %v1741_v26 = vsel %vm94_vm0, %v1735_v52, -inf }
 0xc6c   :  { %1742 = vmax.xlane.f32.xlu1 %v1741_v26  ;;  %v1738_v27 = vsel %vm94_vm0, %v1730_v25, -inf }
 0xc6d   :  { %1739 = vmax.xlane.f32.xlu0 %v1738_v27 }
 0xc7d   :  { %3418 = vrot.lane.b32.xlu1 %v4002_v36, %s3594_s8 }
 0xc81   :  { %1855 = vrot.lane.b32.xlu1 %v4011_v39, %s3594_s8 }
 0xc83   :  { %3413 = vrot.lane.b32.xlu0 %v3994_v32, %s3594_s8 }
 0xc85   :  { %3428 = vrot.lane.b32.xlu1 %v4002_v36, %s3592_s7 }
 0xc87   :  { %1853 = vrot.lane.b32.xlu0 %v4009_v0, %s3594_s8 }
 0xc8b   :  { %3423 = vrot.lane.b32.xlu0 %v3994_v32, %s3592_s7 }
 0xcf9   :  { %v1743_v30 = vpop.xlane.xlu1 %1742 }
 0xcfa   :  { %v1745_v31 = vsub.f32 %v1735_v52, %v1743_v30  ;;  %v1740_v34 = vpop.xlane.xlu0 %1739 }
 0xcfb   :  { %v1744_v35 = vsub.f32 %v1730_v25, %v1740_v34 }
 0xcfc   :  { %v1748_v37 = vmul.f32 1.442695, %v1745_v31 }
 0xcfd   :  { %v1746_v1 = vmul.f32 1.442695, %v1744_v35  ;;  %v3419_v38 = vpop.permute.xlu1 %3418 }
 0xcfe   :  { %v3414_v42 = vpop.permute.xlu0 %3413  ;;  %v3421_v49 = vunpack.i.h.bf16 %v3419_v38  ;;  %v3420_v50 = vunpack.i.l.bf16 %v3419_v38 }
 0xcff   :  { %3504 = vpow2.f32 %v1746_v1  ;;  %v3416_v43 = vunpack.i.h.bf16 %v3414_v42  ;;  %v3415_v44 = vunpack.i.l.bf16 %v3414_v42 }
 0xd00   :  { %3506 = vpow2.f32 %v1748_v37  ;;  %v3259_v62 = vpack.c.bf16 %v3421_v49, %v3420_v50 }
 0xd01   :  { %v3253_v45 = vpack.c.bf16 %v3416_v43, %v3415_v44  ;;  %v1856_v46 = vpop.permute.xlu1 %1855 }
 0xd02   :  { %v1854_v33 = vpop.permute.xlu0 %1853 }
 0xd03   :  { %3255 = vmatprep.subr.msk.bf16.mxu1 %vm3794_vm6, %v3253_v45 }
 0xd05   :  { %v3429_v47 = vpop.permute.xlu1 %3428 }
 0xd06   :  { %v3424_v48 = vpop.permute.xlu0 %3423  ;;  %v3431_v56 = vunpack.i.h.bf16 %v3429_v47  ;;  %v3430_v57 = vunpack.i.l.bf16 %v3429_v47 }
 0xd07   :  { %v3426_v54 = vunpack.i.h.bf16 %v3424_v48  ;;  %v3425_v55 = vunpack.i.l.bf16 %v3424_v48 }
 0xd08   :  { %v3269_v3 = vpack.c.bf16 %v3431_v56, %v3430_v57 }
 0xd09   :  { %v4087_v59 = vpop.eup %3504  ;;  %v3265_v60 = vpack.c.bf16 %v3426_v54, %v3425_v55 }
 0xd0a   :  { %v4089_v61 = vpop.eup %3506  ;;  %3053 = vmatprep.mubr.msk.f32.mxu1 %vm94_vm0, %v4087_v59 }
 0xd0b   :  { %3054 = vmatmul.mubr.msk.f32.vlgmr.msra.gmra.mrb[10].mxu1 %vm94_vm0, %v4089_v61  ;;  %3266 = vmatprep.subr.bf16.mxu0 %v3265_v60  ;;  %v1753_v58 = vsel %vm94_vm0, %v4089_v61, 0.0 }
 0xd0c   :  { %3258 = vmatpush3.bf16.xpose.msk.msra.mxu1 %vm3794_vm6, %v3253_v45  ;;  %3064 = vmatprep.mubr.msk.f32.mxu1 %vm252_vm5, %v1854_v33 }
 0xd0d   :  { %3261 = vmatprep.subr.msk.bf16.mxu1 %vm3794_vm6, %v3259_v62  ;;  %3268 = vmatpush3.bf16.msra.mxu0 %v3265_v60 }
 0xd0e   :  { %3270 = vmatprep.subr.bf16.mxu0 %v3269_v3 }
 0xd11   :  { %3272 = vmatpush3.bf16.msra.mxu0 %v3269_v3  ;;  %v1534_v3 = vsel %vm94_vm0, %v4047_v12, 0.0 }
 0xd14   :  { %3264 = vmatpush3.bf16.xpose.msk.msra.mxu1 %vm3794_vm6, %v3259_v62  ;;  %v1537_v62 = vsel %vm94_vm0, %v4051_v15, 0.0 }
 0xd1b   :  { %3065 = vmatmul.mubr.msk.f32.vlgmr.msra.gmra.mrb[12].mxu1 %vm252_vm5, %v1856_v46 }
 0xdde   :  { %v4103_v4 = vpop.f32.mrb[10].mxu1 }
 0xddf   :  { %v4105_v5 = vpop.f32.mrb[11].mxu1 }
 0xdee   :  { %v3066_v6 = vpop.f32.mrb[12].mxu1 }
 0xdef   :  { %v1949_v7 = vadd.f32 %v3066_v6, %v4020_v40  ;;  %v1943_v8 = vpop.f32.mrb[13].mxu1 }
 0xdf0   :  { %v1944_v9 = vadd.f32 %v1943_v8, %v4025_v41 }
 0xdf1   :  { %v1955_v63 = vsel %vm94_vm0, %v1949_v7, -inf }
 0xdf2   :  { %1956 = vmax.xlane.f32.xlu1 %v1955_v63  ;;  %v1952_v10 = vsel %vm94_vm0, %v1944_v9, -inf }
 0xdf3   :  { %1953 = vmax.xlane.f32.xlu0 %v1952_v10 }
 0xe03   :  { %3438 = vrot.lane.b32.xlu1 %v4002_v36, %s4368_s13 }
 0xe07   :  { %2069 = vrot.lane.b32.xlu1 %v4011_v39, %s4368_s13 }
 0xe09   :  { %3433 = vrot.lane.b32.xlu0 %v3994_v32, %s4368_s13 }
 0xe0d   :  { %2067 = vrot.lane.b32.xlu0 %v4009_v0, %s4368_s13 }
 0xe7f   :  { %v1957_v2 = vpop.xlane.xlu1 %1956 }
 0xe80   :  { %v1959_v11 = vsub.f32 %v1949_v7, %v1957_v2  ;;  %v1954_v13 = vpop.xlane.xlu0 %1953 }
 0xe81   :  { %v1958_v14 = vsub.f32 %v1944_v9, %v1954_v13 }
 0xe82   :  { %v1962_v16 = vmul.f32 1.442695, %v1959_v11 }
 0xe83   :  { %v1960_v17 = vmul.f32 1.442695, %v1958_v14  ;;  %v3439_v39 = vpop.permute.xlu1 %3438 }
 0xe84   :  { %v3434_v18 = vpop.permute.xlu0 %3433  ;;  %v3441_v51 = vunpack.i.h.bf16 %v3439_v39  ;;  %v3440_v23 = vunpack.i.l.bf16 %v3439_v39 }
 0xe85   :  { %3508 = vpow2.f32 %v1960_v17  ;;  %v3436_v19 = vunpack.i.h.bf16 %v3434_v18  ;;  %v3435_v20 = vunpack.i.l.bf16 %v3434_v18  ;;  %v2315_v18 = vld [vmem:[%s4317_s16 + $0x10] sm:$0xff] }
 0xe86   :  { %3510 = vpow2.f32 %v1962_v16  ;;  %v3279_v24 = vpack.c.bf16 %v3441_v51, %v3440_v23 }
 0xe87   :  { %v3273_v21 = vpack.c.bf16 %v3436_v19, %v3435_v20  ;;  %v2070_v26 = vpop.permute.xlu1 %2069  ;;  %v2316_v20 = vld [vmem:[%s4317_s16 + $0x18] sm:$0xff] }
 0xe88   :  { %v2068_v25 = vpop.permute.xlu0 %2067 }
 0xe89   :  { %3275 = vmatprep.subr.msk.bf16.mxu0 %vm3794_vm6, %v3273_v21 }
 0xe8f   :  { %v3509_v52 = vpop.eup %3508 }
 0xe90   :  { %v3511_v0 = vpop.eup %3510  ;;  %3075 = vmatprep.mubr.msk.f32.mxu0 %vm94_vm0, %v3509_v52 }
 0xe91   :  { %3076 = vmatmul.mubr.msk.f32.vlgmr.msra.gmra.mrb[22].mxu0 %vm94_vm0, %v3511_v0  ;;  %v1967_v42 = vsel %vm94_vm0, %v3511_v0, 0.0 }
 0xe92   :  { %3278 = vmatpush3.bf16.xpose.msk.msra.mxu0 %vm3794_vm6, %v3273_v21  ;;  %3086 = vmatprep.mubr.msk.f32.mxu0 %vm252_vm5, %v2068_v25  ;;  %v3297_v21 = vpack.c.bf16 %v2316_v20, %v2315_v18  ;;  %v2564_v18 = vld [vmem:[%s4323_s22 + $0x28] sm:$0xff] }
 0xe93   :  { %3281 = vmatprep.subr.msk.bf16.mxu0 %vm3794_vm6, %v3279_v24 }
 0xe9a   :  { %3284 = vmatpush3.bf16.xpose.msk.msra.mxu0 %vm3794_vm6, %v3279_v24 }
 0xea1   :  { %3087 = vmatmul.mubr.msk.f32.vlgmr.msra.gmra.mrb[24].mxu0 %vm252_vm5, %v2070_v26 }
 0xf64   :  { %v4131_v27 = vpop.f32.mrb[22].mxu0 }
 0xf65   :  { %v4133_v30 = vpop.f32.mrb[23].mxu0 }
 0xf74   :  { %v3088_v31 = vpop.f32.mrb[24].mxu0 }
 0xf75   :  { %v2163_v34 = vadd.f32 %v3088_v31, %v4020_v40  ;;  %v2157_v35 = vpop.f32.mrb[25].mxu0  ;;  %v1750_v40 = vsel %vm94_vm0, %v4087_v59, 0.0 }
 0xf76   :  { %v2158_v37 = vadd.f32 %v2157_v35, %v4025_v41  ;;  %v1964_v41 = vsel %vm94_vm0, %v3509_v52, 0.0 }
 0xf77   :  { %v2169_v1 = vsel %vm94_vm0, %v2163_v34, -inf }
 0xf78   :  { %2170 = vmax.xlane.f32.xlu1 %v2169_v1  ;;  %v2166_v38 = vsel %vm94_vm0, %v2158_v37, -inf }
 0xf79   :  { %2167 = vmax.xlane.f32.xlu0 %v2166_v38 }
 0xf89   :  { %3448 = vrot.lane.b32.xlu1 %v4002_v36, %s4369_s9 }
 0xf8f   :  { %3443 = vrot.lane.b32.xlu0 %v3994_v32, %s4369_s9  ;;  %s3602_s9 = smov [#allocation4]  }
 0xfad   :  { %1754 = vadd.xlane.f32.xlu1 %v1753_v58 }
 0xfae   :  { %1751 = vadd.xlane.f32.xlu0 %v1750_v40 }
 0xfb2   :  { %1965 = vadd.xlane.f32.xlu0 %v1964_v41 }
 0xfb6   :  { %1968 = vadd.xlane.f32.xlu0 %v1967_v42 }
0x1005   :  { %v2171_v43 = vpop.xlane.xlu1 %2170 }
0x1006   :  { %v2173_v44 = vsub.f32 %v2163_v34, %v2171_v43  ;;  %v2168_v36 = vpop.xlane.xlu0 %2167 }
0x1007   :  { %v2172_v45 = vsub.f32 %v2158_v37, %v2168_v36 }
0x1008   :  { %v2176_v46 = vmul.f32 1.442695, %v2173_v44 }
0x1009   :  { %v2174_v32 = vmul.f32 1.442695, %v2172_v45  ;;  %v3449_v33 = vpop.permute.xlu1 %3448 }
0x100a   :  { %3512 = vpow2.f32 %v2176_v46  ;;  %v3451_v47 = vunpack.i.h.bf16 %v3449_v33  ;;  %v3444_v48 = vpop.permute.xlu0 %3443  ;;  %v3450_v49 = vunpack.i.l.bf16 %v3449_v33  ;;  %v2770_v46 = vld [vmem:[%s4318_s17] ss:$0 sm:$0xff] }
0x100b   :  { %3514 = vpow2.f32 %v2174_v32  ;;  %v3446_v50 = vunpack.i.h.bf16 %v3444_v48  ;;  %v3445_v54 = vunpack.i.l.bf16 %v3444_v48 }
0x100c   :  { %v3289_v56 = vpack.c.bf16 %v3451_v47, %v3450_v49 }
0x100d   :  { %v3285_v55 = vpack.c.bf16 %v3446_v50, %v3445_v54 }
0x100f   :  { %3286 = vmatprep.subr.bf16.mxu1 %v3285_v55 }
0x1010   :  { %3288 = vmatpush3.bf16.msra.mxu1 %v3285_v55 }
0x1011   :  { %3290 = vmatprep.subr.bf16.mxu1 %v3289_v56 }
0x1014   :  { %v3513_v57 = vpop.eup %3512  ;;  %3292 = vmatpush3.bf16.msra.mxu1 %v3289_v56 }
0x1015   :  { %v3515_v59 = vpop.eup %3514  ;;  %v2181_v60 = vsel %vm94_vm0, %v3513_v57, 0.0 }
0x1016   :  { %2182 = vadd.xlane.f32.xlu1 %v2181_v60  ;;  %3097 = vmatprep.mubr.msk.f32.mxu1 %vm94_vm0, %v3515_v59  ;;  %v2178_v61 = vsel %vm94_vm0, %v3515_v59, 0.0 }
0x1017   :  { %2179 = vadd.xlane.f32.xlu0 %v2178_v61  ;;  %3098 = vmatmul.mubr.msk.f32.vlgmr.msra.gmra.mrb[14].mxu1 %vm94_vm0, %v3513_v57 }
0x101a   :  { %1538 = vadd.xlane.f32.xlu1 %v1537_v62 }
0x101b   :  { %1535 = vadd.xlane.f32.xlu0 %v1534_v3 }
0x103a   :  { %v1755_v6 = vpop.xlane.xlu1 %1754 }
0x103b   :  { %3516 = vrcp.f32 %v1755_v6  ;;  %v1752_v7 = vpop.xlane.xlu0 %1751 }
0x103c   :  { %3518 = vrcp.f32 %v1752_v7  ;;  %v2465_v7 = vld [vmem:[%s4321_s20] sm:$0xff] }
0x103f   :  { %v1966_v8 = vpop.xlane.xlu0 %1965 }
0x1040   :  { %3520 = vrcp.f32 %v1966_v8  ;;  %v2466_v8 = vld [vmem:[%s4321_s20 + $0x8] sm:$0xff] }
0x1043   :  { %v1969_v9 = vpop.xlane.xlu0 %1968 }
0x1044   :  { %3522 = vrcp.f32 %v1969_v9  ;;  %v2467_v9 = vld [vmem:[%s4321_s20 + $0x10] sm:$0xff] }
0x1045   :  { %v3517_v63 = vpop.eup %3516 }
0x1046   :  { %v3519_v10 = vpop.eup %3518  ;;  %v1852_v2 = vmul.f32 %v3517_v63, %v4103_v4  ;;  %v2313_v4 = vld [vmem:[%s4317_s16] sm:$0xff]  ;;  %v3301_v63 = vpack.c.bf16 %v2466_v8, %v2465_v7 }
0x1047   :  { %v1851_v11 = vmul.f32 %v3519_v10, %v4105_v5  ;;  %v2314_v5 = vld [vmem:[%s4317_s16 + $0x8] sm:$0xff]  ;;  %v2468_v10 = vld [vmem:[%s4321_s20 + $0x18] sm:$0xff] }
0x1048   :  { %2285 = vrot.lane.b32.xlu1 %v1852_v2, %s4370_s30  ;;  %v3293_v19 = vpack.c.bf16 %v2314_v5, %v2313_v4  ;;  %v3305_v2 = vpack.c.bf16 %v2468_v10, %v2467_v9  ;;  %3302 = vmatprep.subr.bf16.mxu0 %v3301_v63  ;;  %v2563_v5 = vld [vmem:[%s4323_s22 + $0x20] sm:$0xff] }
0x1049   :  { %2283 = vrot.lane.b32.xlu0 %v1851_v11, %s4370_s30  ;;  %3304 = vmatpush3.bf16.msra.mxu0 %v3301_v63  ;;  %v2559_v11 = vld [vmem:[%s4323_s22] sm:$0xff] }
0x104a   :  { %v3521_v13 = vpop.eup %3520  ;;  %3294 = vmatprep.subr.bf16.mxu1 %v3293_v19  ;;  %3306 = vmatprep.subr.bf16.mxu0 %v3305_v2 }
0x104b   :  { %v2065_v14 = vmul.f32 %v3521_v13, %v4133_v30  ;;  %3296 = vmatpush3.bf16.msra.mxu1 %v3293_v19  ;;  %v2560_v13 = vld [vmem:[%s4323_s22 + $0x8] sm:$0xff]  ;;  %v3317_v19 = vpack.c.bf16 %v2564_v18, %v2563_v5 }
0x104c   :  { %3298 = vmatprep.subr.bf16.mxu1 %v3297_v21 }
0x104d   :  { %2291 = vrot.lane.b32.xlu1 %v2065_v14, %s4371_s2  ;;  %3308 = vmatpush3.bf16.msra.mxu0 %v3305_v2  ;;  %v2561_v14 = vld [vmem:[%s4323_s22 + $0x10] sm:$0xff] }
0x104e   :  { %v3523_v16 = vpop.eup %3522 }
0x104f   :  { %v2066_v17 = vmul.f32 %v3523_v16, %v4131_v27  ;;  %3300 = vmatpush3.bf16.msra.mxu1 %v3297_v21  ;;  %v3309_v16 = vpack.c.bf16 %v2560_v13, %v2559_v11 }
0x1051   :  { %2293 = vrot.lane.b32.xlu1 %v2066_v17, %s4371_s2  ;;  %v2562_v17 = vld [vmem:[%s4323_s22 + $0x18] sm:$0xff]  ;;  %3310 = vmatprep.subr.bf16.mxu1 %v3309_v16  ;;  %s2679_s2 = sshll.u32 %s3602_s9, 4  ;;  %s2680_s2 = int_to_ptr.vmem [resolvable:$true] %s2679_s2 }
0x1052   :  { %v3313_v4 = vpack.c.bf16 %v2562_v17, %v2561_v14  ;;  %p3545_p1 = scmp.lt.s32.totalorder %s2680_s2, %s2680_s2 }
0x10a3   :  { %v2183_v39 = vpop.xlane.xlu1 %2182 }
0x10a4   :  { %v2180_v51 = vpop.xlane.xlu0 %2179 }
0x10a7   :  { %v1539_v23 = vpop.xlane.xlu1 %1538 }
0x10a8   :  { %3524 = vrcp.f32 %v1539_v23  ;;  %v1536_v52 = vpop.xlane.xlu0 %1535 }
0x10a9   :  { %3526 = vrcp.f32 %v1536_v52 }
0x10aa   :  { %3528 = vrcp.f32 %v2183_v39 }
0x10ab   :  { %3530 = vrcp.f32 %v2180_v51 }
0x10b2   :  { %v3525_v0 = vpop.eup %3524 }
0x10b3   :  { %v3527_v24 = vpop.eup %3526  ;;  %v1638_v25 = vmul.f32 %v3525_v0, %v4051_v15  ;;  %v1636_v26 = vmul.f32 %v3525_v0, %v4065_v53 }
0x10b4   :  { %v1637_v27 = vmul.f32 %v3527_v24, %v4047_v12  ;;  %v1635_v30 = vmul.f32 %v3527_v24, %v4067_v22  ;;  %v3529_v31 = vpop.eup %3528 }
0x10b5   :  { %2312 = vst.msk [vmem:[%s4326_s25 + $0x8] sm:$0xff] %vm94_vm0, %v1638_v25  ;;  %v3531_v34 = vpop.eup %3530 }
0x10b6   :  { %2311 = vst.msk [vmem:[%s4326_s25] sm:$0xff] %vm94_vm0, %v1637_v27 }
0x10ba   :  { %v2286_v22 = vpop.permute.xlu1 %2285 }
0x10bb   :  { %v2284_v38 = vpop.permute.xlu0 %2283  ;;  %v2306_v41 = vsel %vm252_vm5, %v1636_v26, %v2286_v22 }
0x10bc   :  { %v2305_v58 = vsel %vm252_vm5, %v1635_v30, %v2284_v38 }
0x10bf   :  { %v2292_v37 = vpop.permute.xlu1 %2291 }
0x10c0   :  { %v2307_v42 = vsel %vm336_vm7, %v2305_v58, %v2292_v37  ;;  %v2774_v37 = vld [vmem:[%s4320_s19] ss:$0 sm:$0xff] }
0x10c3   :  { %v2294_v1 = vpop.permute.xlu1 %2293 }
0x10c4   :  { %v2308_v44 = vsel %vm336_vm7, %v2306_v41, %v2294_v1 }
0x10ea   :  { %v3099_v15 = vpop.f32.mrb[14].mxu1 }
0x10eb   :  { %v2280_v53 = vmul.f32 %v3529_v31, %v3099_v15  ;;  %v2270_v35 = vpop.f32.mrb[15].mxu1 }
0x10ec   :  { %v2279_v12 = vmul.f32 %v3531_v34, %v2270_v35 }
0x10ed   :  { %2301 = vrot.lane.b32.xlu1 %v2280_v53, %s4372_s29 }
0x10ee   :  { %2299 = vrot.lane.b32.xlu0 %v2279_v12, %s4372_s29  ;;  %v2773_v12 = vld [vmem:[%s4319_s18] ss:$0 sm:$0xff] }
0x115f   :  { %v2302_v40 = vpop.permute.xlu1 %2301 }
0x1160   :  { %v2300_v43 = vpop.permute.xlu0 %2299  ;;  %v2310_v45 = vsel %vm1074_vm8, %v2308_v44, %v2302_v40  ;;  %v2566_v44 = vld [vmem:[%s4323_s22 + $0x38] sm:$0xff] }
0x1161   :  { %v2309_v36 = vsel %vm1074_vm8, %v2307_v42, %v2300_v43  ;;  %v2565_v43 = vld [vmem:[%s4323_s22 + $0x30] sm:$0xff]  ;;  %s3540_s22 = scalar_lea.vmem %s2680_s2, 256 }
0x1162   :  { %3108 = vmatprep.mubr.msk.f32.mxu1 %vm94_vm0, %v2309_v36  ;;  %v3321_v36 = vpack.c.bf16 %v2566_v44, %v2565_v43  ;;  %p3541_p0 = scmp.ne.s32.totalorder %s2680_s2, %s3540_s22  ;;  %p3546_p2 = scmp.lt.s32.totalorder %s3540_s22, %s3540_s22 }
0x1163   :  { %3109 = vmatmul.mubr.msk.f32.vlgmr.msra.gmra.mrb[16].mxu1 %vm94_vm0, %v2310_v45  ;;  %v2775_v45 = vld [vmem:[%s4322_s21] ss:$0 sm:$0xff] }
0x1164   :  { %3312 = vmatpush3.bf16.msra.mxu1 %v3309_v16  ;;  %p3547_p3 = por %p3546_p2, %p3545_p1 }
0x1165   :  { %3314 = vmatprep.subr.bf16.mxu1 %v3313_v4 }
0x1166   :  { %p3548_p4 = pnand %p3547_p3, %p3541_p0 }
0x1168   :  { %3316 = vmatpush3.bf16.msra.mxu1 %v3313_v4 }
0x1169   :  { %3318 = vmatprep.subr.bf16.mxu1 %v3317_v19 }
0x116c   :  { %3320 = vmatpush3.bf16.msra.mxu1 %v3317_v19 }
0x116d   :  { %3322 = vmatprep.subr.bf16.mxu1 %v3321_v36 }
0x1170   :  { %3324 = vmatpush3.bf16.msra.mxu1 %v3321_v36 }
0x1236   :  { %v3110_v32 = vpop.f32.mrb[16].mxu1 }
0x1237   :  { %v2402_v33 = vadd.f32 %v3110_v32, %v2770_v46  ;;  %v2396_v47 = vpop.f32.mrb[17].mxu1 }
0x1238   :  { %v2397_v48 = vadd.f32 %v2770_v46, %v2396_v47 }
0x1239   :  { %v4203_v49 = vadd.f32 %v2402_v33, %v3925_v28 }
0x123a   :  { %v4206_v50 = vadd.f32 %v2397_v48, %v3928_v29 }
0x123b   :  { %v2412_v54 = vsel %vm94_vm0, %v4203_v49, 0.0 }
0x123c   :  { %2413 = vadd.xlane.f32.xlu1 %v2412_v54  ;;  %v2409_v55 = vsel %vm94_vm0, %v4206_v50, 0.0 }
0x123d   :  { %2410 = vadd.xlane.f32.xlu0 %v2409_v55 }
0x12c9   :  { %v2414_v56 = vpop.xlane.xlu1 %2413 }
0x12ca   :  { %v2416_v57 = vmul.f32 0.03125, %v2414_v56  ;;  %v2411_v59 = vpop.xlane.xlu0 %2410 }
0x12cb   :  { %v2415_v60 = vmul.f32 0.03125, %v2411_v59 }
0x12cc   :  { %v4213_v61 = vsub.f32 %v4203_v49, %v2416_v57 }
0x12cd   :  { %v2417_v28 = vsub.f32 %v4206_v50, %v2415_v60 }
0x12ce   :  { %v2420_v3 = vmul.f32 %v4213_v61, %v4213_v61 }
0x12cf   :  { %v2419_v62 = vmul.f32 %v2417_v28, %v2417_v28 }
0x12d0   :  { %v2424_v6 = vsel %vm94_vm0, %v2420_v3, 0.0 }
0x12d1   :  { %v2421_v29 = vsel %vm94_vm0, %v2419_v62, 0.0 }
0x12d2   :  { %2422 = vadd.xlane.f32.xlu0 %v2421_v29 }
0x12d6   :  { %2425 = vadd.xlane.f32.xlu0 %v2424_v6 }
0x135f   :  { %v2423_v20 = vpop.xlane.xlu0 %2422 }
0x1360   :  { %v2427_v21 = vmul.f32 0.032258064, %v2423_v20 }
0x1362   :  { %3532 = vrsqrt.f32 %v2427_v21  ;;  %vm2431_vm13 = vcmp.eq.f32.partialorder %v2427_v21, inf  ;;  %v2434_v0 = vand.u32 2147483648, %v2427_v21  ;;  %vm2433_vm14 = vcmp.eq.f32.partialorder %v2427_v21, 0.0 }
0x1363   :  { %v2426_v39 = vpop.xlane.xlu0 %2425 }
0x1364   :  { %v2428_v51 = vmul.f32 0.032258064, %v2426_v39 }
0x1366   :  { %3534 = vrsqrt.f32 %v2428_v51  ;;  %vm2438_vm15 = vcmp.eq.f32.partialorder %v2428_v51, inf  ;;  %v2441_v31 = vand.u32 2147483648, %v2428_v51  ;;  %vm2440_vm1 = vcmp.eq.f32.partialorder %v2428_v51, 0.0 }
0x136c   :  { %v3533_v23 = vpop.eup %3532 }
0x136d   :  { %v2430_v52 = vmul.f32 %v3533_v23, %v2427_v21 }
0x136f   :  { %v2432_v24 = vsel %vm2431_vm13, %v2427_v21, %v2430_v52 }
0x1370   :  { %v3535_v25 = vpop.eup %3534  ;;  %v2435_v26 = vsel %vm2433_vm14, %v2434_v0, %v2432_v24 }
0x1371   :  { %v2443_v27 = vadd.f32 1e-06, %v2435_v26  ;;  %v2437_v30 = vmul.f32 %v3535_v25, %v2428_v51 }
0x1373   :  { %3536 = vrcp.f32 %v2443_v27  ;;  %v2439_v15 = vsel %vm2438_vm15, %v2428_v51, %v2437_v30 }
0x1374   :  { %v2442_v34 = vsel %vm2440_vm1, %v2441_v31, %v2439_v15 }
0x1375   :  { %v2444_v53 = vadd.f32 1e-06, %v2442_v34 }
0x1377   :  { %3538 = vrcp.f32 %v2444_v53 }
0x137d   :  { %v3537_v35 = vpop.eup %3536 }
0x137e   :  { %v2447_v22 = vmul.f32 %v3537_v35, %v2417_v28 }
0x1380   :  { %v2455_v1 = vmul.f32 %v2773_v12, %v2447_v22 }
0x1381   :  { %v3539_v38 = vpop.eup %3538 }
0x1382   :  { %v2448_v58 = vmul.f32 %v3539_v38, %v4213_v61  ;;  %v2463_v40 = vadd.f32 %v2774_v37, %v2455_v1 }
0x1384   :  { %v2456_v41 = vmul.f32 %v2773_v12, %v2448_v58  ;;  %3119 = vmatprep.mubr.msk.f32.mxu0 %vm94_vm0, %v2463_v40 }
0x1386   :  { %v2464_v42 = vadd.f32 %v2774_v37, %v2456_v41 }
0x1388   :  { %3120 = vmatmul.mubr.msk.f32.vlgmr.msra.gmra.mrb[26].mxu0 %vm94_vm0, %v2464_v42 }
0x145b   :  { %v3121_v46 = vpop.f32.mrb[26].mxu0 }
0x145c   :  { %v2554_v32 = vadd.f32 %v3121_v46, %v2775_v45  ;;  %v2548_v33 = vpop.f32.mrb[27].mxu0 }
0x145d   :  { %v2549_v47 = vadd.f32 %v2775_v45, %v2548_v33 }
0x145e   :  { %v2558_v54 = vmax.f32 %v2554_v32, 0.0 }
0x145f   :  { %v2557_v48 = vmax.f32 %v2549_v47, 0.0 }
0x1461   :  { %3138 = vmatprep.mubr.msk.f32.mxu1 %vm2574_vm2, %v2557_v48 }
0x1462   :  { %3139 = vmatmul.mubr.msk.f32.vlgmr.msra.gmra.mrb[18].mxu1 %vm2574_vm2, %v2558_v54 }
0x1463   :  { %3551 = shalt.err (!%p3548_p4)
}
0x1464   :  { %s3552_s8 = scalar_lea.hbm %s4327_s26, 256 }
0x1465   :  { %p3553_p5 = scmp.ne.s32.totalorder %s4327_s26, %s3552_s8  ;;  %p3556_p6 = scmp.lt.u32.totalorder %s3552_s8, %s4327_s26 }
0x1467   :  { %p3558_p7 = pnand %p3556_p6, %p3553_p5 }
0x1469   :  { %3561 = shalt.err (!%p3558_p7)
}
0x146a   :  { %s3603_s28 = smov 128   ;;  %v2778_v55 = vld [vmem:[%s4324_s23] ss:$0 sm:$0xff]  ;;  %s3604_s11 = smov [#allocation2]  }
0x146b   :  { %2685 = dma.vmem_to_hbm [thread:$0]  %s2680_s2, 256, %s4327_s26, [#allocation5], %s3603_s28, %s3603_s28, %s4370_s30  }
0x146c   :  { %s2665_s15 = sshll.u32 %s3604_s11, 4  ;;  %s2666_s15 = int_to_ptr.vmem [resolvable:$true] %s2665_s15 }
0x146d   :  { %s3562_s26 = scalar_lea.vmem %s2666_s15, 256  ;;  %p3567_p9 = scmp.lt.s32.totalorder %s2666_s15, %s2666_s15 }
0x146e   :  { %p3563_p8 = scmp.ne.s32.totalorder %s2666_s15, %s3562_s26  ;;  %p3568_p10 = scmp.lt.s32.totalorder %s3562_s26, %s3562_s26 }
0x1470   :  { %p3569_p11 = por %p3568_p10, %p3567_p9 }
0x1472   :  { %p3570_p12 = pnand %p3569_p11, %p3563_p8 }
0x1535   :  { %v3140_v56 = vpop.f32.mrb[18].mxu1 }
0x1536   :  { %v2653_v57 = vadd.f32 %v3140_v56, %v2778_v55  ;;  %v2647_v59 = vpop.f32.mrb[19].mxu1 }
0x1537   :  { %v2648_v60 = vadd.f32 %v2778_v55, %v2647_v59 }
0x1538   :  { %v2657_v61 = vadd.f32 %v2653_v57, %v4203_v49 }
0x1539   :  { %v2656_v28 = vadd.f32 %v2648_v60, %v4206_v50 }
0x153a   :  { %2659 = vst.msk [vmem:[#allocation2 + $0x8] sm:$0xff] %vm94_vm0, %v2657_v61 }
0x153b   :  { %2658 = vst.msk [vmem:[#allocation2] sm:$0xff] %vm94_vm0, %v2656_v28 }
0x153c   :  { %3573 = shalt.err (!%p3570_p12)
}
0x153d   :  { %s3574_s25 = scalar_lea.hbm %s4325_s24, 256 }
0x153e   :  { %p3575_p13 = scmp.ne.s32.totalorder %s4325_s24, %s3574_s25  ;;  %p3578_p0 = scmp.lt.u32.totalorder %s3574_s25, %s4325_s24 }
0x1540   :  { %p3580_p1 = pnand %p3578_p0, %p3575_p13 }
0x1542   :  { %3583 = shalt.err (!%p3580_p1)
}
0x1543   :  { %2671 = dma.vmem_to_hbm [thread:$0]  %s2666_s15, 256, %s4325_s24, [#allocation3], %s3603_s28, %s3603_s28, %s4370_s30  }
0x1544   :  { %3584 = dma.done.wait [#allocation3], 256  }
0x1545   :  { %3585 = vsyncadd [#allocation3], 4294967040 }
0x1546   :  { %3586 = dma.done.wait [#allocation5], 256  }
0x1547   :  { %3587 = vsyncadd [#allocation5], 4294967040 }
0x1548   :  { %2694 = vsyncpa [#allocation3], 1 }
0x1549   :  { %2695 = vsyncpa [#allocation5], 1 }

</bundles_post_ra>
